<compile_context>
chip_gen: v7x
topology: tpu7x:2x2x1
jax: 0.10.0
libtpu: 0.0.40
codegen_flags: <defaults>
</compile_context>

<pallas_src>
import functools
import math

import jax
import jax.numpy as jnp
from jax.experimental import pallas as pl
from jax.experimental.pallas import tpu as pltpu


def _layer_norm(x, gamma, beta, eps=1e-6):
    # x: (L, D) f32; gamma/beta: (1, D) f32  (THP uses eps=1e-6)
    mean = jnp.mean(x, axis=-1, keepdims=True)
    var = jnp.mean((x - mean) ** 2, axis=-1, keepdims=True)
    return (x - mean) * jax.lax.rsqrt(var + eps) * gamma + beta


def _gelu_exact(x):
    # matches torch.nn.functional.gelu (erf form)
    return 0.5 * x * (1.0 + jax.lax.erf(x * (1.0 / math.sqrt(2.0))))


def encoder_layer_kernel(
    lens_ref,                                   # SMEM, (B,) int32 (scalar prefetch)
    enc_ref,                                    # (1, L, D) f32
    ln1_g_ref, ln1_b_ref,                       # (1, D) f32
    wqkv_ref,                                   # (D, 2*H*dk + H*dv) bf16 (wq pre-scaled)
    wo_ref, bo_ref,                             # (H, dv, D) bf16, (1, D) f32
    ln2_g_ref, ln2_b_ref,                       # (1, D) f32
    w1_ref, b1_ref, w2_ref, b2_ref,             # bf16 / f32
    out_ref, attn_out_ref,                      # (1, L, D) f32, (1, H, L, L) f32
    *, n_head, d_k, d_v,
):
    b = pl.program_id(0)
    length = lens_ref[b]                        # scalar int32 from SMEM

    x = enc_ref[0]                              # (L, D) f32
    L, D = x.shape
    Hd = n_head * d_k
    Hv = n_head * d_v

    # ---- masks built in-kernel (no (B,L,L) DMA) ----
    q_idx = jax.lax.broadcasted_iota(jnp.int32, (L, L), 0)
    k_idx = jax.lax.broadcasted_iota(jnp.int32, (L, L), 1)
    masked = jnp.logical_or(k_idx >= length, k_idx > q_idx)      # (L, L) bool
    row_idx = jax.lax.broadcasted_iota(jnp.int32, (L, D), 0)
    keep = row_idx < length                                      # (L, D) bool (non-pad)

    # ---- MultiHeadAttention (normalize_before=True) ----
    xn = _layer_norm(x, ln1_g_ref[...], ln1_b_ref[...])
    xn_bf = xn.astype(jnp.bfloat16)

    # fused QKV projection: one wide matmul on the MXU
    qkv = jnp.dot(xn_bf, wqkv_ref[...],
                  preferred_element_type=jnp.float32).astype(jnp.bfloat16)
    q_all = qkv[:, :Hd]                                           # (L, Hd)
    k_all = qkv[:, Hd:2 * Hd]                                     # (L, Hd)
    v_all = qkv[:, 2 * Hd:2 * Hd + Hv]                            # (L, Hv)

    # (H, L, dk/dv) head-batched layout (static lane slices, small H)
    q3 = jnp.stack([q_all[:, h * d_k:(h + 1) * d_k] for h in range(n_head)], axis=0)
    k3 = jnp.stack([k_all[:, h * d_k:(h + 1) * d_k] for h in range(n_head)], axis=0)
    v3 = jnp.stack([v_all[:, h * d_v:(h + 1) * d_v] for h in range(n_head)], axis=0)

    # scores: batched QK^T, contraction on last dims (no explicit transpose);
    # 1/sqrt(d_k) was folded into wq in the wrapper.
    scores = jnp.einsum('hqd,hkd->hqk', q3, k3,
                        preferred_element_type=jnp.float32)      # (H, L, L) f32
    scores = jnp.where(masked[None, :, :], jnp.float32(-1e9), scores)

    m = jnp.max(scores, axis=-1, keepdims=True)
    e = jnp.exp(scores - m)
    denom = jnp.sum(e, axis=-1, keepdims=True)
    p = e * pl.reciprocal(denom, approx=True)                    # softmax
    attn_out_ref[0] = p                                          # (H, L, L)

    ctx3 = jnp.einsum('hqk,hkd->hqd', p.astype(jnp.bfloat16), v3,
                      preferred_element_type=jnp.float32)        # (H, L, dv)

    # output projection as batched matmul + head-sum (no lane concat)
    out3 = jnp.einsum('hlv,hvd->hld', ctx3.astype(jnp.bfloat16), wo_ref[...],
                      preferred_element_type=jnp.float32)        # (H, L, D)
    attn_proj = jnp.sum(out3, axis=0) + bo_ref[...] + x          # residual
    attn_proj = jnp.where(keep, attn_proj, 0.0)                  # *= non_pad_mask

    # ---- PositionwiseFeedForward (normalize_before=True, GELU) ----
    y = _layer_norm(attn_proj, ln2_g_ref[...], ln2_b_ref[...])
    h1 = jnp.dot(y.astype(jnp.bfloat16), w1_ref[...],
                 preferred_element_type=jnp.float32) + b1_ref[...]
    h1 = _gelu_exact(h1)
    y2 = jnp.dot(h1.astype(jnp.bfloat16), w2_ref[...],
                 preferred_element_type=jnp.float32) + b2_ref[...]
    y2 = y2 + attn_proj                                          # residual
    y2 = jnp.where(keep, y2, 0.0)                                # *= non_pad_mask

    out_ref[0] = y2


def encoder_layer_2(enc_input, lengths, params, *, n_head, d_k, d_v):
    """THP EncoderLayer_2 forward.  lengths: (B,) int32 valid-token counts."""
    B, L, D = enc_input.shape
    d_inner = params["w1"].shape[1]
    Hd, Hv = n_head * d_k, n_head * d_v

    # bf16 weights for the MXU; fold 1/sqrt(d_k) into wq; fuse Q/K/V weights;
    # reshape wo per-head.
    wq_scaled = params["wq"] * (1.0 / math.sqrt(d_k))
    wqkv_bf = jnp.concatenate(
        [wq_scaled, params["wk"], params["wv"]], axis=1).astype(jnp.bfloat16)
    wo_bf = params["wo"].reshape(n_head, d_v, D).astype(jnp.bfloat16)
    w1_bf = params["w1"].astype(jnp.bfloat16)
    w2_bf = params["w2"].astype(jnp.bfloat16)

    def _const_spec(shape):
        n = len(shape)
        return pl.BlockSpec(shape, lambda b, lens, _n=n: (0,) * _n)

    in_specs = [
        pl.BlockSpec((1, L, D), lambda b, lens: (b, 0, 0)),      # enc_input
        _const_spec((1, D)), _const_spec((1, D)),                # ln1 gamma/beta
        _const_spec((D, 2 * Hd + Hv)),                           # fused wqkv
        _const_spec((n_head, d_v, D)), _const_spec((1, D)),      # wo (per-head), bo
        _const_spec((1, D)), _const_spec((1, D)),                # ln2 gamma/beta
        _const_spec((D, d_inner)), _const_spec((1, d_inner)),    # w1, b1
        _const_spec((d_inner, D)), _const_spec((1, D)),          # w2, b2
    ]
    out_specs = (
        pl.BlockSpec((1, L, D), lambda b, lens: (b, 0, 0)),
        pl.BlockSpec((1, n_head, L, L), lambda b, lens: (b, 0, 0, 0)),
    )
    out_shape = (
        jax.ShapeDtypeStruct((B, L, D), jnp.float32),
        jax.ShapeDtypeStruct((B, n_head, L, L), jnp.float32),
    )

    flops = B * (2 * L * D * (2 * Hd + Hv)
                 + 2 * n_head * L * L * d_k + 2 * n_head * L * L * d_v
                 + 2 * L * Hv * D + 2 * L * D * d_inner * 2)
    transcendentals = B * (n_head * L * L + L * d_inner + 2 * L)
    bytes_accessed = (B * L * D * 4 * 2 + B * n_head * L * L * 4 + B * 4
                      + 2 * (D * (2 * Hd + Hv) + Hv * D + 2 * D * d_inner)
                      + 4 * (6 * D + d_inner))

    kernel = functools.partial(encoder_layer_kernel,
                               n_head=n_head, d_k=d_k, d_v=d_v)

    return pl.pallas_call(
        kernel,
        out_shape=out_shape,
        grid_spec=pltpu.PrefetchScalarGridSpec(
            num_scalar_prefetch=1,
            grid=(B,),
            in_specs=in_specs,
            out_specs=out_specs,
        ),
        compiler_params=pltpu.CompilerParams(
            dimension_semantics=("parallel",),
            vmem_limit_bytes=64 * 1024 * 1024),
        cost_estimate=pl.CostEstimate(
            flops=flops, transcendentals=transcendentals,
            bytes_accessed=bytes_accessed),
    )(lengths, enc_input,
      params["ln1_g"], params["ln1_b"],
      wqkv_bf, wo_bf, params["bo"],
      params["ln2_g"], params["ln2_b"],
      w1_bf, params["b1"], w2_bf, params["b2"])


def _xavier_uniform(key, shape):
    fan_in, fan_out = shape
    bound = math.sqrt(6.0 / (fan_in + fan_out))
    return jax.random.uniform(key, shape, jnp.float32, -bound, bound)


def init_params(key, d_model, d_inner, n_head, d_k, d_v):
    ks = jax.random.split(key, 8)
    return {
        "ln1_g": jnp.ones((1, d_model), jnp.float32),
        "ln1_b": jnp.zeros((1, d_model), jnp.float32),
        "wq": _xavier_uniform(ks[0], (d_model, n_head * d_k)),
        "wk": _xavier_uniform(ks[1], (d_model, n_head * d_k)),
        "wv": _xavier_uniform(ks[2], (d_model, n_head * d_v)),
        "wo": _xavier_uniform(ks[3], (n_head * d_v, d_model)),
        "bo": jnp.zeros((1, d_model), jnp.float32),
        "ln2_g": jnp.ones((1, d_model), jnp.float32),
        "ln2_b": jnp.zeros((1, d_model), jnp.float32),
        "w1": _xavier_uniform(ks[4], (d_model, d_inner)),
        "b1": jnp.zeros((1, d_inner), jnp.float32),
        "w2": _xavier_uniform(ks[5], (d_inner, d_model)),
        "b2": jnp.zeros((1, d_model), jnp.float32),
    }


def _reference(enc_input, lengths, params, n_head, d_k, d_v):
    # pure-JAX f32 reference of the THP forward (for a tolerance sanity check)
    B, L, D = enc_input.shape
    pos = jnp.arange(L)
    npm = (pos[None, :] < lengths[:, None]).astype(jnp.float32)[:, :, None]
    key_pad = pos[None, None, :] >= lengths[:, None, None]
    subseq = pos[None, :, None] < pos[None, None, :]
    mask = key_pad | subseq

    def ln(x, g, b):
        mean = x.mean(-1, keepdims=True)
        var = ((x - mean) ** 2).mean(-1, keepdims=True)
        return (x - mean) * jax.lax.rsqrt(var + 1e-6) * g + b

    x = enc_input
    xn = ln(x, params["ln1_g"], params["ln1_b"])
    q = (xn @ params["wq"]).reshape(B, L, n_head, d_k).transpose(0, 2, 1, 3)
    k = (xn @ params["wk"]).reshape(B, L, n_head, d_k).transpose(0, 2, 1, 3)
    v = (xn @ params["wv"]).reshape(B, L, n_head, d_v).transpose(0, 2, 1, 3)
    scores = jnp.einsum('bhqd,bhkd->bhqk', q / math.sqrt(d_k), k)
    scores = jnp.where(mask[:, None], -1e9, scores)
    p = jax.nn.softmax(scores, axis=-1)
    ctx = jnp.einsum('bhqk,bhkd->bhqd', p, v)
    ctx = ctx.transpose(0, 2, 1, 3).reshape(B, L, n_head * d_v)
    attn = (ctx @ params["wo"] + params["bo"] + x) * npm
    y = ln(attn, params["ln2_g"], params["ln2_b"])
    h = jax.nn.gelu(y @ params["w1"] + params["b1"], approximate=False)
    out = (h @ params["w2"] + params["b2"] + attn) * npm
    return out, p


if __name__ == "__main__":
    # Small, forward-consistent shapes.
    B, L = 2, 8
    d_model, d_inner = 32, 64
    n_head, d_k, d_v = 4, 8, 8

    key = jax.random.PRNGKey(0)
    k_in, k_par = jax.random.split(key)

    enc_input = jax.random.normal(k_in, (B, L, d_model), jnp.float32)
    lengths = jnp.array([L, L - 2], jnp.int32)       # per-batch valid lengths

    params = init_params(k_par, d_model, d_inner, n_head, d_k, d_v)

    enc_out, enc_slf_attn = encoder_layer_2(
        enc_input, lengths, params, n_head=n_head, d_k=d_k, d_v=d_v)
    jax.block_until_ready((enc_out, enc_slf_attn))

    assert enc_out.shape == (B, L, d_model)
    assert enc_slf_attn.shape == (B, n_head, L, L)

    ref_out, ref_p = _reference(enc_input, lengths, params, n_head, d_k, d_v)
    max_out_err = float(jnp.max(jnp.abs(enc_out - ref_out)))
    max_p_err = float(jnp.max(jnp.abs(enc_slf_attn - ref_p)))
    assert bool(jnp.all(jnp.isfinite(enc_out)))
    assert max_out_err < 0.2, max_out_err      # bf16 matmuls + approx recip
    assert max_p_err < 0.05, max_p_err
    # padded rows are exactly zeroed by the in-kernel non-pad mask
    assert float(jnp.max(jnp.abs(enc_out[1, L - 2:, :]))) == 0.0

    print("KERNEL_OK")
</pallas_src>

<mosaic_0001>
module attributes {stable_mosaic.version = 11 : i64} {
  func.func @encoder_layer_kernel(%arg0: i32, %arg1: memref<2xi32, #tpu.memory_space<smem>>, %arg2: memref<1x8x32xf32, #tpu.memory_space<vmem>>, %arg3: memref<1x32xf32, #tpu.memory_space<vmem>>, %arg4: memref<1x32xf32, #tpu.memory_space<vmem>>, %arg5: memref<32x96xbf16, #tpu.memory_space<vmem>>, %arg6: memref<4x8x32xbf16, #tpu.memory_space<vmem>>, %arg7: memref<1x32xf32, #tpu.memory_space<vmem>>, %arg8: memref<1x32xf32, #tpu.memory_space<vmem>>, %arg9: memref<1x32xf32, #tpu.memory_space<vmem>>, %arg10: memref<32x64xbf16, #tpu.memory_space<vmem>>, %arg11: memref<1x64xf32, #tpu.memory_space<vmem>>, %arg12: memref<64x32xbf16, #tpu.memory_space<vmem>>, %arg13: memref<1x32xf32, #tpu.memory_space<vmem>>, %arg14: memref<1x8x32xf32, #tpu.memory_space<vmem>>, %arg15: memref<1x4x8x8xf32, #tpu.memory_space<vmem>>) attributes {dimension_semantics = [#tpu.dimension_semantics<parallel>], iteration_bounds = array<i64: 2>, scalar_prefetch = 1 : i64, scratch_operands = 0 : i64, tpu.core_type = #tpu.core_type<tc>, window_params = [{transform_indices = @transform_0, window_bounds = array<i64: 1, 8, 32>}, {pipeline_mode = #tpu.pipeline_mode<synchronous>, transform_indices = @transform_1, window_bounds = array<i64: 1, 32>}, {pipeline_mode = #tpu.pipeline_mode<synchronous>, transform_indices = @transform_2, window_bounds = array<i64: 1, 32>}, {pipeline_mode = #tpu.pipeline_mode<synchronous>, transform_indices = @transform_3, window_bounds = array<i64: 32, 96>}, {pipeline_mode = #tpu.pipeline_mode<synchronous>, transform_indices = @transform_4, window_bounds = array<i64: 4, 8, 32>}, {pipeline_mode = #tpu.pipeline_mode<synchronous>, transform_indices = @transform_5, window_bounds = array<i64: 1, 32>}, {pipeline_mode = #tpu.pipeline_mode<synchronous>, transform_indices = @transform_6, window_bounds = array<i64: 1, 32>}, {pipeline_mode = #tpu.pipeline_mode<synchronous>, transform_indices = @transform_7, window_bounds = array<i64: 1, 32>}, {pipeline_mode = #tpu.pipeline_mode<synchronous>, transform_indices = @transform_8, window_bounds = array<i64: 32, 64>}, {pipeline_mode = #tpu.pipeline_mode<synchronous>, transform_indices = @transform_9, window_bounds = array<i64: 1, 64>}, {pipeline_mode = #tpu.pipeline_mode<synchronous>, transform_indices = @transform_10, window_bounds = array<i64: 64, 32>}, {pipeline_mode = #tpu.pipeline_mode<synchronous>, transform_indices = @transform_11, window_bounds = array<i64: 1, 32>}, {transform_indices = @transform_12, window_bounds = array<i64: 1, 8, 32>}, {transform_indices = @transform_13, window_bounds = array<i64: 1, 4, 8, 8>}]} {
    %0 = arith.index_cast %arg0 : i32 to index
    %1 = memref.load %arg1[%0] : memref<2xi32, #tpu.memory_space<smem>>
    %c0 = arith.constant 0 : index
    %c0_0 = arith.constant 0 : index
    %c0_1 = arith.constant 0 : index
    %2 = vector.load %arg2[%c0, %c0_0, %c0_1] : memref<1x8x32xf32, #tpu.memory_space<vmem>>, vector<1x8x32xf32>
    %3 = vector.shape_cast %2 : vector<1x8x32xf32> to vector<8x32xf32>
    %4 = tpu.iota {dimensions = array<i32: 0>} : vector<8x8xi32>
    %5 = tpu.iota {dimensions = array<i32: 1>} : vector<8x8xi32>
    %6 = vector.broadcast %1 : i32 to vector<8x8xi32>
    %7 = arith.cmpi sge, %5, %6 : vector<8x8xi32>
    %8 = arith.cmpi sgt, %5, %4 : vector<8x8xi32>
    %9 = arith.ori %7, %8 : vector<8x8xi1>
    %10 = tpu.iota {dimensions = array<i32: 0>} : vector<8x32xi32>
    %11 = vector.broadcast %1 : i32 to vector<8x32xi32>
    %12 = arith.cmpi slt, %10, %11 : vector<8x32xi32>
    %c0_2 = arith.constant 0 : index
    %c0_3 = arith.constant 0 : index
    %13 = vector.load %arg3[%c0_2, %c0_3] : memref<1x32xf32, #tpu.memory_space<vmem>>, vector<1x32xf32>
    %c0_4 = arith.constant 0 : index
    %c0_5 = arith.constant 0 : index
    %14 = vector.load %arg4[%c0_4, %c0_5] : memref<1x32xf32, #tpu.memory_space<vmem>>, vector<1x32xf32>
    %cst = arith.constant dense<0.000000e+00> : vector<8xf32>
    %15 = vector.multi_reduction <add>, %3, %cst [1] : vector<8x32xf32> to vector<8xf32>
    %16 = vector.shape_cast %15 : vector<8xf32> to vector<8x1xf32>
    %cst_6 = arith.constant 3.200000e+01 : f32
    %17 = vector.broadcast %cst_6 : f32 to vector<8x1xf32>
    %18 = arith.divf %16, %17 : vector<8x1xf32>
    %19 = vector.broadcast %18 : vector<8x1xf32> to vector<8x32xf32>
    %20 = arith.subf %3, %19 : vector<8x32xf32>
    %21 = arith.mulf %20, %20 : vector<8x32xf32>
    %cst_7 = arith.constant dense<0.000000e+00> : vector<8xf32>
    %22 = vector.multi_reduction <add>, %21, %cst_7 [1] : vector<8x32xf32> to vector<8xf32>
    %23 = vector.shape_cast %22 : vector<8xf32> to vector<8x1xf32>
    %cst_8 = arith.constant 3.200000e+01 : f32
    %24 = vector.broadcast %cst_8 : f32 to vector<8x1xf32>
    %25 = arith.divf %23, %24 : vector<8x1xf32>
    %26 = vector.broadcast %18 : vector<8x1xf32> to vector<8x32xf32>
    %27 = arith.subf %3, %26 : vector<8x32xf32>
    %cst_9 = arith.constant 9.99999997E-7 : f32
    %28 = vector.broadcast %cst_9 : f32 to vector<8x1xf32>
    %29 = arith.addf %25, %28 : vector<8x1xf32>
    %30 = math.rsqrt %29 : vector<8x1xf32>
    %31 = vector.broadcast %30 : vector<8x1xf32> to vector<8x32xf32>
    %32 = arith.mulf %27, %31 : vector<8x32xf32>
    %33 = vector.broadcast %13 : vector<1x32xf32> to vector<8x32xf32>
    %34 = arith.mulf %32, %33 : vector<8x32xf32>
    %35 = vector.broadcast %14 : vector<1x32xf32> to vector<8x32xf32>
    %36 = arith.addf %34, %35 : vector<8x32xf32>
    %37 = arith.truncf %36 : vector<8x32xf32> to vector<8x32xbf16>
    %c0_10 = arith.constant 0 : index
    %c0_11 = arith.constant 0 : index
    %38 = vector.load %arg5[%c0_10, %c0_11] : memref<32x96xbf16, #tpu.memory_space<vmem>>, vector<32x96xbf16>
    %cst_12 = arith.constant dense<0.000000e+00> : vector<8x96xf32>
    %39 = tpu.matmul %37, %38, %cst_12 {dimension_numbers = #tpu.dot_dimension_numbers<[1], [0], [0], [1], [0, 0, 1, 1], [], []>} : vector<8x32xbf16>, vector<32x96xbf16>, vector<8x96xf32> -> vector<8x96xf32>
    %40 = arith.truncf %39 : vector<8x96xf32> to vector<8x96xbf16>
    %41 = vector.extract_strided_slice %40 {offsets = [0, 0], sizes = [8, 32], strides = [1, 1]} : vector<8x96xbf16> to vector<8x32xbf16>
    %42 = vector.extract_strided_slice %40 {offsets = [0, 32], sizes = [8, 32], strides = [1, 1]} : vector<8x96xbf16> to vector<8x32xbf16>
    %43 = vector.extract_strided_slice %40 {offsets = [0, 64], sizes = [8, 32], strides = [1, 1]} : vector<8x96xbf16> to vector<8x32xbf16>
    %44 = vector.extract_strided_slice %41 {offsets = [0, 0], sizes = [8, 8], strides = [1, 1]} : vector<8x32xbf16> to vector<8x8xbf16>
    %45 = vector.extract_strided_slice %41 {offsets = [0, 8], sizes = [8, 8], strides = [1, 1]} : vector<8x32xbf16> to vector<8x8xbf16>
    %46 = vector.extract_strided_slice %41 {offsets = [0, 16], sizes = [8, 8], strides = [1, 1]} : vector<8x32xbf16> to vector<8x8xbf16>
    %47 = vector.extract_strided_slice %41 {offsets = [0, 24], sizes = [8, 8], strides = [1, 1]} : vector<8x32xbf16> to vector<8x8xbf16>
    %48 = vector.shape_cast %44 : vector<8x8xbf16> to vector<1x8x8xbf16>
    %49 = vector.shape_cast %45 : vector<8x8xbf16> to vector<1x8x8xbf16>
    %50 = vector.shape_cast %46 : vector<8x8xbf16> to vector<1x8x8xbf16>
    %51 = vector.shape_cast %47 : vector<8x8xbf16> to vector<1x8x8xbf16>
    %52 = tpu.concatenate %48, %49, %50, %51 in 0 : vector<1x8x8xbf16>, vector<1x8x8xbf16>, vector<1x8x8xbf16>, vector<1x8x8xbf16> -> vector<4x8x8xbf16>
    %53 = vector.extract_strided_slice %42 {offsets = [0, 0], sizes = [8, 8], strides = [1, 1]} : vector<8x32xbf16> to vector<8x8xbf16>
    %54 = vector.extract_strided_slice %42 {offsets = [0, 8], sizes = [8, 8], strides = [1, 1]} : vector<8x32xbf16> to vector<8x8xbf16>
    %55 = vector.extract_strided_slice %42 {offsets = [0, 16], sizes = [8, 8], strides = [1, 1]} : vector<8x32xbf16> to vector<8x8xbf16>
    %56 = vector.extract_strided_slice %42 {offsets = [0, 24], sizes = [8, 8], strides = [1, 1]} : vector<8x32xbf16> to vector<8x8xbf16>
    %57 = vector.shape_cast %53 : vector<8x8xbf16> to vector<1x8x8xbf16>
    %58 = vector.shape_cast %54 : vector<8x8xbf16> to vector<1x8x8xbf16>
    %59 = vector.shape_cast %55 : vector<8x8xbf16> to vector<1x8x8xbf16>
    %60 = vector.shape_cast %56 : vector<8x8xbf16> to vector<1x8x8xbf16>
    %61 = tpu.concatenate %57, %58, %59, %60 in 0 : vector<1x8x8xbf16>, vector<1x8x8xbf16>, vector<1x8x8xbf16>, vector<1x8x8xbf16> -> vector<4x8x8xbf16>
    %62 = vector.extract_strided_slice %43 {offsets = [0, 0], sizes = [8, 8], strides = [1, 1]} : vector<8x32xbf16> to vector<8x8xbf16>
    %63 = vector.extract_strided_slice %43 {offsets = [0, 8], sizes = [8, 8], strides = [1, 1]} : vector<8x32xbf16> to vector<8x8xbf16>
    %64 = vector.extract_strided_slice %43 {offsets = [0, 16], sizes = [8, 8], strides = [1, 1]} : vector<8x32xbf16> to vector<8x8xbf16>
    %65 = vector.extract_strided_slice %43 {offsets = [0, 24], sizes = [8, 8], strides = [1, 1]} : vector<8x32xbf16> to vector<8x8xbf16>
    %66 = vector.shape_cast %62 : vector<8x8xbf16> to vector<1x8x8xbf16>
    %67 = vector.shape_cast %63 : vector<8x8xbf16> to vector<1x8x8xbf16>
    %68 = vector.shape_cast %64 : vector<8x8xbf16> to vector<1x8x8xbf16>
    %69 = vector.shape_cast %65 : vector<8x8xbf16> to vector<1x8x8xbf16>
    %70 = tpu.concatenate %66, %67, %68, %69 in 0 : vector<1x8x8xbf16>, vector<1x8x8xbf16>, vector<1x8x8xbf16>, vector<1x8x8xbf16> -> vector<4x8x8xbf16>
    "tpu.trace_start"() <{level = 10 : i32, message = "hqd,hkd->hqk"}> : () -> ()
    %cst_13 = arith.constant dense<0.000000e+00> : vector<4x8x8xf32>
    %71 = tpu.matmul %52, %61, %cst_13 {dimension_numbers = #tpu.dot_dimension_numbers<[2], [2], [1], [1], [0, 0, 0, 1, 1, 1], [0], [0]>} : vector<4x8x8xbf16>, vector<4x8x8xbf16>, vector<4x8x8xf32> -> vector<4x8x8xf32>
    "tpu.trace_stop"() : () -> ()
    %72 = vector.shape_cast %9 : vector<8x8xi1> to vector<1x8x8xi1>
    %cst_14 = arith.constant -1.000000e+09 : f32
    %73 = vector.shape_cast %72 : vector<1x8x8xi1> to vector<1x8x8xi1>
    %74 = vector.broadcast %73 : vector<1x8x8xi1> to vector<4x8x8xi1>
    %75 = vector.broadcast %cst_14 : f32 to vector<4x8x8xf32>
    %76 = arith.select %74, %75, %71 : vector<4x8x8xi1>, vector<4x8x8xf32>
    %cst_15 = arith.constant dense<0xFF800000> : vector<4x8xf32>
    %77 = vector.multi_reduction <maximumf>, %76, %cst_15 [2] : vector<4x8x8xf32> to vector<4x8xf32>
    %78 = vector.shape_cast %77 : vector<4x8xf32> to vector<4x8x1xf32>
    %79 = vector.broadcast %78 : vector<4x8x1xf32> to vector<4x8x8xf32>
    %80 = arith.subf %76, %79 : vector<4x8x8xf32>
    %81 = math.exp %80 : vector<4x8x8xf32>
    %cst_16 = arith.constant dense<0.000000e+00> : vector<4x8xf32>
    %82 = vector.multi_reduction <add>, %81, %cst_16 [2] : vector<4x8x8xf32> to vector<4x8xf32>
    %83 = vector.shape_cast %82 : vector<4x8xf32> to vector<4x8x1xf32>
    %84 = tpu.reciprocal %83 {approx = true} : vector<4x8x1xf32> -> vector<4x8x1xf32>
    %85 = vector.broadcast %84 : vector<4x8x1xf32> to vector<4x8x8xf32>
    %86 = arith.mulf %81, %85 : vector<4x8x8xf32>
    %c0_17 = arith.constant 0 : index
    %c0_18 = arith.constant 0 : index
    %c0_19 = arith.constant 0 : index
    %c0_20 = arith.constant 0 : index
    %87 = vector.load %arg15[%c0_17, %c0_18, %c0_19, %c0_20] : memref<1x4x8x8xf32, #tpu.memory_space<vmem>>, vector<1x4x8x8xf32>
    %88 = vector.shape_cast %87 : vector<1x4x8x8xf32> to vector<4x8x8xf32>
    %89 = vector.shape_cast %86 : vector<4x8x8xf32> to vector<1x4x8x8xf32>
    tpu.vector_store %arg15[%c0_17, %c0_18, %c0_19, %c0_20], %89 {strides = array<i32>} : memref<1x4x8x8xf32, #tpu.memory_space<vmem>>, vector<1x4x8x8xf32>,
    %90 = arith.truncf %86 : vector<4x8x8xf32> to vector<4x8x8xbf16>
    "tpu.trace_start"() <{level = 10 : i32, message = "hqk,hkd->hqd"}> : () -> ()
    %cst_21 = arith.constant dense<0.000000e+00> : vector<4x8x8xf32>
    %91 = tpu.matmul %90, %70, %cst_21 {dimension_numbers = #tpu.dot_dimension_numbers<[2], [1], [1], [2], [0, 0, 0, 1, 1, 2], [0], [0]>} : vector<4x8x8xbf16>, vector<4x8x8xbf16>, vector<4x8x8xf32> -> vector<4x8x8xf32>
    "tpu.trace_stop"() : () -> ()
    %92 = arith.truncf %91 : vector<4x8x8xf32> to vector<4x8x8xbf16>
    %c0_22 = arith.constant 0 : index
    %c0_23 = arith.constant 0 : index
    %c0_24 = arith.constant 0 : index
    %93 = vector.load %arg6[%c0_22, %c0_23, %c0_24] : memref<4x8x32xbf16, #tpu.memory_space<vmem>>, vector<4x8x32xbf16>
    "tpu.trace_start"() <{level = 10 : i32, message = "hlv,hvd->hld"}> : () -> ()
    %cst_25 = arith.constant dense<0.000000e+00> : vector<4x8x32xf32>
    %94 = tpu.matmul %92, %93, %cst_25 {dimension_numbers = #tpu.dot_dimension_numbers<[2], [1], [1], [2], [0, 0, 0, 1, 1, 2], [0], [0]>} : vector<4x8x8xbf16>, vector<4x8x32xbf16>, vector<4x8x32xf32> -> vector<4x8x32xf32>
    "tpu.trace_stop"() : () -> ()
    %cst_26 = arith.constant dense<0.000000e+00> : vector<8x32xf32>
    %95 = vector.multi_reduction <add>, %94, %cst_26 [0] : vector<4x8x32xf32> to vector<8x32xf32>
    %c0_27 = arith.constant 0 : index
    %c0_28 = arith.constant 0 : index
    %96 = vector.load %arg7[%c0_27, %c0_28] : memref<1x32xf32, #tpu.memory_space<vmem>>, vector<1x32xf32>
    %97 = vector.broadcast %96 : vector<1x32xf32> to vector<8x32xf32>
    %98 = arith.addf %95, %97 : vector<8x32xf32>
    %99 = arith.addf %98, %3 : vector<8x32xf32>
    %cst_29 = arith.constant 0.000000e+00 : f32
    %100 = vector.broadcast %cst_29 : f32 to vector<8x32xf32>
    %101 = arith.select %12, %99, %100 : vector<8x32xi1>, vector<8x32xf32>
    %c0_30 = arith.constant 0 : index
    %c0_31 = arith.constant 0 : index
    %102 = vector.load %arg8[%c0_30, %c0_31] : memref<1x32xf32, #tpu.memory_space<vmem>>, vector<1x32xf32>
    %c0_32 = arith.constant 0 : index
    %c0_33 = arith.constant 0 : index
    %103 = vector.load %arg9[%c0_32, %c0_33] : memref<1x32xf32, #tpu.memory_space<vmem>>, vector<1x32xf32>
    %cst_34 = arith.constant dense<0.000000e+00> : vector<8xf32>
    %104 = vector.multi_reduction <add>, %101, %cst_34 [1] : vector<8x32xf32> to vector<8xf32>
    %105 = vector.shape_cast %104 : vector<8xf32> to vector<8x1xf32>
    %cst_35 = arith.constant 3.200000e+01 : f32
    %106 = vector.broadcast %cst_35 : f32 to vector<8x1xf32>
    %107 = arith.divf %105, %106 : vector<8x1xf32>
    %108 = vector.broadcast %107 : vector<8x1xf32> to vector<8x32xf32>
    %109 = arith.subf %101, %108 : vector<8x32xf32>
    %110 = arith.mulf %109, %109 : vector<8x32xf32>
    %cst_36 = arith.constant dense<0.000000e+00> : vector<8xf32>
    %111 = vector.multi_reduction <add>, %110, %cst_36 [1] : vector<8x32xf32> to vector<8xf32>
    %112 = vector.shape_cast %111 : vector<8xf32> to vector<8x1xf32>
    %cst_37 = arith.constant 3.200000e+01 : f32
    %113 = vector.broadcast %cst_37 : f32 to vector<8x1xf32>
    %114 = arith.divf %112, %113 : vector<8x1xf32>
    %115 = vector.broadcast %107 : vector<8x1xf32> to vector<8x32xf32>
    %116 = arith.subf %101, %115 : vector<8x32xf32>
    %cst_38 = arith.constant 9.99999997E-7 : f32
    %117 = vector.broadcast %cst_38 : f32 to vector<8x1xf32>
    %118 = arith.addf %114, %117 : vector<8x1xf32>
    %119 = math.rsqrt %118 : vector<8x1xf32>
    %120 = vector.broadcast %119 : vector<8x1xf32> to vector<8x32xf32>
    %121 = arith.mulf %116, %120 : vector<8x32xf32>
    %122 = vector.broadcast %102 : vector<1x32xf32> to vector<8x32xf32>
    %123 = arith.mulf %121, %122 : vector<8x32xf32>
    %124 = vector.broadcast %103 : vector<1x32xf32> to vector<8x32xf32>
    %125 = arith.addf %123, %124 : vector<8x32xf32>
    %126 = arith.truncf %125 : vector<8x32xf32> to vector<8x32xbf16>
    %c0_39 = arith.constant 0 : index
    %c0_40 = arith.constant 0 : index
    %127 = vector.load %arg10[%c0_39, %c0_40] : memref<32x64xbf16, #tpu.memory_space<vmem>>, vector<32x64xbf16>
    %cst_41 = arith.constant dense<0.000000e+00> : vector<8x64xf32>
    %128 = tpu.matmul %126, %127, %cst_41 {dimension_numbers = #tpu.dot_dimension_numbers<[1], [0], [0], [1], [0, 0, 1, 1], [], []>} : vector<8x32xbf16>, vector<32x64xbf16>, vector<8x64xf32> -> vector<8x64xf32>
    %c0_42 = arith.constant 0 : index
    %c0_43 = arith.constant 0 : index
    %129 = vector.load %arg11[%c0_42, %c0_43] : memref<1x64xf32, #tpu.memory_space<vmem>>, vector<1x64xf32>
    %130 = vector.broadcast %129 : vector<1x64xf32> to vector<8x64xf32>
    %131 = arith.addf %128, %130 : vector<8x64xf32>
    %cst_44 = arith.constant 5.000000e-01 : f32
    %132 = vector.broadcast %cst_44 : f32 to vector<8x64xf32>
    %133 = arith.mulf %132, %131 : vector<8x64xf32>
    %cst_45 = arith.constant 0.707106769 : f32
    %134 = vector.broadcast %cst_45 : f32 to vector<8x64xf32>
    %135 = arith.mulf %131, %134 : vector<8x64xf32>
    %136 = math.erf %135 : vector<8x64xf32>
    %cst_46 = arith.constant 1.000000e+00 : f32
    %137 = vector.broadcast %cst_46 : f32 to vector<8x64xf32>
    %138 = arith.addf %137, %136 : vector<8x64xf32>
    %139 = arith.mulf %133, %138 : vector<8x64xf32>
    %140 = arith.truncf %139 : vector<8x64xf32> to vector<8x64xbf16>
    %c0_47 = arith.constant 0 : index
    %c0_48 = arith.constant 0 : index
    %141 = vector.load %arg12[%c0_47, %c0_48] : memref<64x32xbf16, #tpu.memory_space<vmem>>, vector<64x32xbf16>
    %cst_49 = arith.constant dense<0.000000e+00> : vector<8x32xf32>
    %142 = tpu.matmul %140, %141, %cst_49 {dimension_numbers = #tpu.dot_dimension_numbers<[1], [0], [0], [1], [0, 0, 1, 1], [], []>} : vector<8x64xbf16>, vector<64x32xbf16>, vector<8x32xf32> -> vector<8x32xf32>
    %c0_50 = arith.constant 0 : index
    %c0_51 = arith.constant 0 : index
    %143 = vector.load %arg13[%c0_50, %c0_51] : memref<1x32xf32, #tpu.memory_space<vmem>>, vector<1x32xf32>
    %144 = vector.broadcast %143 : vector<1x32xf32> to vector<8x32xf32>
    %145 = arith.addf %142, %144 : vector<8x32xf32>
    %146 = arith.addf %145, %101 : vector<8x32xf32>
    %cst_52 = arith.constant 0.000000e+00 : f32
    %147 = vector.broadcast %cst_52 : f32 to vector<8x32xf32>
    %148 = arith.select %12, %146, %147 : vector<8x32xi1>, vector<8x32xf32>
    %c0_53 = arith.constant 0 : index
    %c0_54 = arith.constant 0 : index
    %c0_55 = arith.constant 0 : index
    %149 = vector.load %arg14[%c0_53, %c0_54, %c0_55] : memref<1x8x32xf32, #tpu.memory_space<vmem>>, vector<1x8x32xf32>
    %150 = vector.shape_cast %149 : vector<1x8x32xf32> to vector<8x32xf32>
    %151 = vector.shape_cast %148 : vector<8x32xf32> to vector<1x8x32xf32>
    tpu.vector_store %arg14[%c0_53, %c0_54, %c0_55], %151 {strides = array<i32>} : memref<1x8x32xf32, #tpu.memory_space<vmem>>, vector<1x8x32xf32>,
    return
  }
  func.func @transform_0(%arg0: i32, %arg1: memref<2xi32, #tpu.memory_space<smem>>) -> (i32, i32, i32) {
    %c0_i32 = arith.constant 0 : i32
    %c0_i32_0 = arith.constant 0 : i32
    %c0_i32_1 = arith.constant 0 : i32
    return %arg0, %c0_i32, %c0_i32_0 : i32, i32, i32
  }
  func.func @transform_1(%arg0: i32, %arg1: memref<2xi32, #tpu.memory_space<smem>>) -> (i32, i32) {
    %c0_i32 = arith.constant 0 : i32
    %c0_i32_0 = arith.constant 0 : i32
    %c0_i32_1 = arith.constant 0 : i32
    return %c0_i32, %c0_i32_0 : i32, i32
  }
  func.func @transform_2(%arg0: i32, %arg1: memref<2xi32, #tpu.memory_space<smem>>) -> (i32, i32) {
    %c0_i32 = arith.constant 0 : i32
    %c0_i32_0 = arith.constant 0 : i32
    %c0_i32_1 = arith.constant 0 : i32
    return %c0_i32, %c0_i32_0 : i32, i32
  }
  func.func @transform_3(%arg0: i32, %arg1: memref<2xi32, #tpu.memory_space<smem>>) -> (i32, i32) {
    %c0_i32 = arith.constant 0 : i32
    %c0_i32_0 = arith.constant 0 : i32
    %c0_i32_1 = arith.constant 0 : i32
    return %c0_i32, %c0_i32_0 : i32, i32
  }
  func.func @transform_4(%arg0: i32, %arg1: memref<2xi32, #tpu.memory_space<smem>>) -> (i32, i32, i32) {
    %c0_i32 = arith.constant 0 : i32
    %c0_i32_0 = arith.constant 0 : i32
    %c0_i32_1 = arith.constant 0 : i32
    %c0_i32_2 = arith.constant 0 : i32
    return %c0_i32, %c0_i32_0, %c0_i32_1 : i32, i32, i32
  }
  func.func @transform_5(%arg0: i32, %arg1: memref<2xi32, #tpu.memory_space<smem>>) -> (i32, i32) {
    %c0_i32 = arith.constant 0 : i32
    %c0_i32_0 = arith.constant 0 : i32
    %c0_i32_1 = arith.constant 0 : i32
    return %c0_i32, %c0_i32_0 : i32, i32
  }
  func.func @transform_6(%arg0: i32, %arg1: memref<2xi32, #tpu.memory_space<smem>>) -> (i32, i32) {
    %c0_i32 = arith.constant 0 : i32
    %c0_i32_0 = arith.constant 0 : i32
    %c0_i32_1 = arith.constant 0 : i32
    return %c0_i32, %c0_i32_0 : i32, i32
  }
  func.func @transform_7(%arg0: i32, %arg1: memref<2xi32, #tpu.memory_space<smem>>) -> (i32, i32) {
    %c0_i32 = arith.constant 0 : i32
    %c0_i32_0 = arith.constant 0 : i32
    %c0_i32_1 = arith.constant 0 : i32
    return %c0_i32, %c0_i32_0 : i32, i32
  }
  func.func @transform_8(%arg0: i32, %arg1: memref<2xi32, #tpu.memory_space<smem>>) -> (i32, i32) {
    %c0_i32 = arith.constant 0 : i32
    %c0_i32_0 = arith.constant 0 : i32
    %c0_i32_1 = arith.constant 0 : i32
    return %c0_i32, %c0_i32_0 : i32, i32
  }
  func.func @transform_9(%arg0: i32, %arg1: memref<2xi32, #tpu.memory_space<smem>>) -> (i32, i32) {
    %c0_i32 = arith.constant 0 : i32
    %c0_i32_0 = arith.constant 0 : i32
    %c0_i32_1 = arith.constant 0 : i32
    return %c0_i32, %c0_i32_0 : i32, i32
  }
  func.func @transform_10(%arg0: i32, %arg1: memref<2xi32, #tpu.memory_space<smem>>) -> (i32, i32) {
    %c0_i32 = arith.constant 0 : i32
    %c0_i32_0 = arith.constant 0 : i32
    %c0_i32_1 = arith.constant 0 : i32
    return %c0_i32, %c0_i32_0 : i32, i32
  }
  func.func @transform_11(%arg0: i32, %arg1: memref<2xi32, #tpu.memory_space<smem>>) -> (i32, i32) {
    %c0_i32 = arith.constant 0 : i32
    %c0_i32_0 = arith.constant 0 : i32
    %c0_i32_1 = arith.constant 0 : i32
    return %c0_i32, %c0_i32_0 : i32, i32
  }
  func.func @transform_12(%arg0: i32, %arg1: memref<2xi32, #tpu.memory_space<smem>>) -> (i32, i32, i32) {
    %c0_i32 = arith.constant 0 : i32
    %c0_i32_0 = arith.constant 0 : i32
    %c0_i32_1 = arith.constant 0 : i32
    return %arg0, %c0_i32, %c0_i32_0 : i32, i32, i32
  }
  func.func @transform_13(%arg0: i32, %arg1: memref<2xi32, #tpu.memory_space<smem>>) -> (i32, i32, i32, i32) {
    %c0_i32 = arith.constant 0 : i32
    %c0_i32_0 = arith.constant 0 : i32
    %c0_i32_1 = arith.constant 0 : i32
    %c0_i32_2 = arith.constant 0 : i32
    return %arg0, %c0_i32, %c0_i32_0, %c0_i32_1 : i32, i32, i32, i32
  }
}

</mosaic_0001>

<bundles_post_ra>
// kernel: tpu_custom_call.1
= control target key start
LH: loop header
LB: loop body
LE: loop exit
PB: predicated region body
PF: predicated region fallthrough
CT: control target
= control target key end

     0   :  { %s3447_s0 = inlined_call_operand.hbm [shape: s32[2], index: 0, kind: input, shape index: {}]   ;;  %s3448_s1 = inlined_call_operand.hbm [shape: f32[2,8,32], index: 1, kind: input, shape index: {}]   ;;  %s3449_s2 = inlined_call_operand.hbm [shape: f32[1,32], index: 2, kind: input, shape index: {}]   ;;  %s3450_s3 = inlined_call_operand.hbm [shape: f32[1,32], index: 3, kind: input, shape index: {}]   ;;  %s3451_s4 = inlined_call_operand.hbm [shape: bf16[32,96], index: 4, kind: input, shape index: {}]   ;;  %s3452_s5 = inlined_call_operand.hbm [shape: bf16[4,8,32], index: 5, kind: input, shape index: {}]   ;;  %s3453_s6 = inlined_call_operand.hbm [shape: f32[1,32], index: 6, kind: input, shape index: {}]   ;;  %s3454_s7 = inlined_call_operand.hbm [shape: f32[1,32], index: 7, kind: input, shape index: {}]   ;;  %s3455_s8 = inlined_call_operand.hbm [shape: f32[1,32], index: 8, kind: input, shape index: {}]   ;;  %s3456_s9 = inlined_call_operand.hbm [shape: bf16[32,64], index: 9, kind: input, shape index: {}]   ;;  %s3457_s10 = inlined_call_operand.hbm [shape: f32[1,64], index: 10, kind: input, shape index: {}]   ;;  %s3458_s11 = inlined_call_operand.hbm [shape: bf16[64,32], index: 11, kind: input, shape index: {}]   ;;  %s3459_s12 = inlined_call_operand.hbm [shape: f32[1,32], index: 12, kind: input, shape index: {}]   ;;  %s3460_s13 = inlined_call_operand.hbm [shape: f32[2,8,32], index: 13, kind: output, shape index: {0}]   ;;  %s3461_s14 = inlined_call_operand.hbm [shape: f32[2,4,8,8], index: 14, kind: output, shape index: {1}]  }
   0x1   :  { %3473 = sst [smem:[#allocation38_spill]] %s3448_s1  ;;  %s2220_s15 = scalar_lea.hbm %s3447_s0, 16 }
   0x2   :  { %3474 = sst [smem:[#allocation39_spill]] %s3449_s2  ;;  %p2221_p0 = scmp.ne.s32.totalorder %s3447_s0, %s2220_s15 }
   0x3   :  { %3475 = sst [smem:[#allocation40_spill]] %s3450_s3  ;;  %p2224_p1 = scmp.lt.u32.totalorder %s2220_s15, %s3447_s0 }
   0x4   :  { %3476 = sst [smem:[#allocation41_spill]] %s3451_s4 }
   0x5   :  { %3477 = sst [smem:[#allocation42_spill]] %s3452_s5  ;;  %p2226_p2 = pnand %p2224_p1, %p2221_p0 }
   0x6   :  { %3478 = sst [smem:[#allocation43_spill]] %s3460_s13 }
   0x7   :  { %3479 = sst [smem:[#allocation44_spill]] %s3461_s14 }
   0x8   :  { %2229 = shalt.err (!%p2226_p2)  }
   0x9   :  { %s2694_s20 = smov [#allocation3]  }
   0xa   :  { %21 = dma.hbm_to_smem %s3447_s0, 16, %s2694_s20, [#allocation2] }
   0xb   :  { %2640 = dma.done.wait [#allocation2], 16 }
   0xc   :  { %2641 = vsyncadd [#allocation2], 4294967280 }
   0xd   :  { %23 = sfence }
   0xe   :  { %24 = vsyncpa [#allocation5], 0 }
   0xf   :  { %26 = vsyncpa [#allocation5 + $0x1], 0 }
  0x10   :  { %27 = vsyncpa [#allocation8], 0 }
  0x11   :  { %28 = vsyncpa [#allocation11], 0 }
  0x12   :  { %29 = vsyncpa [#allocation14], 0 }
  0x13   :  { %30 = vsyncpa [#allocation17], 0 }
  0x14   :  { %31 = vsyncpa [#allocation20], 0 }
  0x15   :  { %32 = vsyncpa [#allocation23], 0 }
  0x16   :  { %33 = vsyncpa [#allocation6], 0 }
  0x17   :  { %35 = vsyncpa [#allocation6 + $0x1], 0 }
  0x18   :  { %36 = vsyncpa [#allocation26], 0 }
  0x19   :  { %38 = vsyncpa [#allocation26 + $0x1], 0  ;;  %s2807_s23 = smov 0   ;;  %s2809_s24 = smov 0  }
  0x1a   :  { %s2811_s0 = smov 0   ;;  %s2813_s25 = smov 0  }
  0x1b LB: > { %s2695_s26 = smov [#allocation7]   ;;  %s2828_s28 = sadd.s32 4294967295, %s2692_s25   ;;  %s2692_s25 = sphi %s2813_s25, %s3523_s25   ;;  %s2688_s0 = sphi %s2811_s0, %s3522_s0   ;;  %s2684_s24 = sphi %s2809_s24, %s3521_s24   ;;  %s2680_s23 = sphi %s2807_s23, %s3520_s23  }
  0x1c   : > { %s371_s27 = sshll.u32 %s2695_s26, 4  ;;  %p1813_p3 = scmp.ge.s32.totalorder %s2692_s25, 1  ;;  %s2833_s27 = int_to_ptr.vmem [resolvable:$true] %s371_s27 }
  0x1d   : > { %p3469_p4 = scmp.eq.s32.totalorder %s2828_s28, 0  ;;  %p358_p5 = scmp.lt.s32.totalorder %s2692_s25, 3 }
  0x1e   : > { %s2696_s30 = smov [#allocation10]   ;;  %s2697_s17 = smov [#allocation13]  }
  0x1f   : > { %p2835_p6 = pnand %p1813_p3, %p358_p5  ;;  %s392_s15 = sshll.u32 %s2696_s30, 4  ;;  %s2842_s15 = int_to_ptr.vmem [resolvable:$true] %s392_s15 }
  0x20   : > { %s419_s18 = sshll.u32 %s2697_s17, 4  ;;  %s3483_s2 = sld [smem:[#allocation39_spill]]  ;;  %s2850_s18 = int_to_ptr.vmem [resolvable:$true] %s419_s18 }
  0x21   : > { %s3480_s29 = scalar_select %p2835_p6, 1, 0 }
  0x22   : > { %p2066_p8 = pneg %p2835_p6 }
  0x23   : > { %3481 = sst [smem:[#allocation37_spill]] %s3480_s29 }
  0x24   : > { %p2846_p9 = pnand %p2066_p8, %p3469_p4 }
  0x26   : > { %s2230_s21 = scalar_lea.hbm %s3483_s2, 16  ;;  %p2860_p11 = pneg %p2846_p9 }
  0x27   : > { %p2231_p10 = scmp.ne.s32.totalorder %s3483_s2, %s2230_s21  ;;  %p2237_p0 = scmp.lt.u32.totalorder %s2230_s21, %s3483_s2 }
  0x29   : > { %p2233_p12 = pnand %p2860_p11, %p2231_p10 }
  0x2b   : > { %p2234_p13 = pneg %p2233_p12 }
  0x2d   : > { %p2239_p1 = pnand %p2237_p0, %p2234_p13 }
  0x2f   : > { %2242 = shalt.err (!%p2239_p1)
}
  0x30   : > { %s2243_s19 = scalar_lea.vmem %s2833_s27, 16  ;;  %s2250_s20 = scalar_lea.vmem %s2833_s27, 32 }
  0x31   : > { %p2244_p2 = scmp.ne.s32.totalorder %s2833_s27, %s2243_s19  ;;  %p2251_p8 = scmp.lt.s32.totalorder %s2833_s27, %s2833_s27 }
  0x32   : > { %p2252_p10 = scmp.lt.s32.totalorder %s2250_s20, %s2243_s19 }
  0x33   : > { %p2246_p3 = pnand %p2244_p2, %p2860_p11 }
  0x34   : > { %p2253_p12 = por %p2252_p10, %p2251_p8 }
  0x35   : > { %p2247_p5 = pneg %p2246_p3 }
  0x37   : > { %p2254_p7 = pnand %p2253_p12, %p2247_p5 }
  0x39   : > { %2257 = shalt.err (!%p2254_p7)
}
  0x3a   : > { %2069 = dma.hbm_to_vmem [thread:$0]  (!%p2846_p9), %s3483_s2, 16, %s2833_s27, [#allocation8]  }
  0x3b   : > { %s3485_s4 = sld [smem:[#allocation41_spill]] }
  0x41   : > { %s2258_s17 = scalar_lea.hbm %s3485_s4, 256 }
  0x42   : > { %p2259_p13 = scmp.ne.s32.totalorder %s3485_s4, %s2258_s17  ;;  %p2265_p7 = scmp.lt.u32.totalorder %s2258_s17, %s3485_s4 }
  0x44   : > { %p2261_p0 = pnand %p2259_p13, %p2860_p11 }
  0x46   : > { %p2262_p1 = pneg %p2261_p0 }
  0x48   : > { %p2267_p2 = pnand %p2265_p7, %p2262_p1 }
  0x4a   : > { %2270 = shalt.err (!%p2267_p2)
}
  0x4b   : > { %s2271_s27 = scalar_lea.vmem %s2842_s15, 256  ;;  %p2279_p10 = scmp.lt.s32.totalorder %s2842_s15, %s2842_s15 }
  0x4c   : > { %p2272_p3 = scmp.ne.s32.totalorder %s2842_s15, %s2271_s27  ;;  %p2280_p12 = scmp.lt.s32.totalorder %s2271_s27, %s2271_s27 }
  0x4e   : > { %p2274_p5 = pnand %p2272_p3, %p2860_p11  ;;  %p2281_p13 = por %p2280_p12, %p2279_p10 }
  0x50   : > { %p2275_p8 = pneg %p2274_p5 }
  0x52   : > { %p2282_p0 = pnand %p2281_p13, %p2275_p8 }
  0x54   : > { %2285 = shalt.err (!%p2282_p0)
}
  0x55   : > { %s3465_s14 = smov 64   ;;  %s3467_s29 = smov 4  }
  0x56   : > { %2075 = dma.hbm_to_vmem [thread:$0]  (!%p2846_p9), %s3485_s4, 256, %s2842_s15, [#allocation11], %s3465_s14, %s3465_s14, %s3467_s29  }
  0x57   : > { %s2286_s17 = scalar_lea.hbm %s3453_s6, 16 }
  0x58   : > { %p2287_p1 = scmp.ne.s32.totalorder %s3453_s6, %s2286_s17  ;;  %p2293_p3 = scmp.lt.u32.totalorder %s2286_s17, %s3453_s6 }
  0x5a   : > { %p2289_p7 = pnand %p2287_p1, %p2860_p11 }
  0x5c   : > { %p2290_p2 = pneg %p2289_p7 }
  0x5e   : > { %p2295_p5 = pnand %p2293_p3, %p2290_p2 }
  0x60   : > { %2298 = shalt.err (!%p2295_p5)
}
  0x61   : > { %s2299_s15 = scalar_lea.vmem %s2850_s18, 16  ;;  %s2306_s13 = scalar_lea.vmem %s2850_s18, 32 }
  0x62   : > { %p2300_p8 = scmp.ne.s32.totalorder %s2850_s18, %s2299_s15  ;;  %p2307_p13 = scmp.lt.s32.totalorder %s2850_s18, %s2850_s18 }
  0x63   : > { %p2308_p0 = scmp.lt.s32.totalorder %s2306_s13, %s2299_s15 }
  0x64   : > { %p2302_p10 = pnand %p2300_p8, %p2860_p11 }
  0x65   : > { %p2309_p1 = por %p2308_p0, %p2307_p13 }
  0x66   : > { %p2303_p12 = pneg %p2302_p10 }
  0x68   : > { %p2310_p7 = pnand %p2309_p1, %p2303_p12 }
  0x6a   : > { %2313 = shalt.err (!%p2310_p7)
}
  0x6b   : > { %2081 = dma.hbm_to_vmem [thread:$0]  (!%p2846_p9), %s3453_s6, 16, %s2850_s18, [#allocation14]  }
  0x6c   : > { %s2700_s22 = smov [#allocation16]   ;;  %s2701_s17 = smov [#allocation19]  }
  0x6d   : > { %s441_s26 = sshll.u32 %s2700_s22, 4  ;;  %s465_s19 = sshll.u32 %s2701_s17, 4  ;;  %s442_s26 = int_to_ptr.vmem [resolvable:$true] %s441_s26  ;;  %s466_s19 = int_to_ptr.vmem [resolvable:$true] %s465_s19 }
  0x6e   : > { %s2314_s15 = scalar_lea.hbm %s3455_s8, 16 }
  0x6f   : > { %p2315_p2 = scmp.ne.s32.totalorder %s3455_s8, %s2314_s15  ;;  %p2321_p8 = scmp.lt.u32.totalorder %s2314_s15, %s3455_s8 }
  0x71   : > { %p2317_p3 = pnand %p2315_p2, %p2860_p11 }
  0x73   : > { %p2318_p5 = pneg %p2317_p3 }
  0x75   : > { %p2323_p10 = pnand %p2321_p8, %p2318_p5 }
  0x77   : > { %2326 = shalt.err (!%p2323_p10)
}
  0x78   : > { %s2327_s18 = scalar_lea.vmem %s442_s26, 16  ;;  %s2334_s21 = scalar_lea.vmem %s442_s26, 32 }
  0x79   : > { %p2328_p12 = scmp.ne.s32.totalorder %s442_s26, %s2327_s18  ;;  %p2335_p1 = scmp.lt.s32.totalorder %s442_s26, %s442_s26 }
  0x7a   : > { %p2336_p7 = scmp.lt.s32.totalorder %s2334_s21, %s2327_s18 }
  0x7b   : > { %p2330_p13 = pnand %p2328_p12, %p2860_p11 }
  0x7c   : > { %p2337_p4 = por %p2336_p7, %p2335_p1 }
  0x7d   : > { %p2331_p0 = pneg %p2330_p13 }
  0x7f   : > { %p2338_p6 = pnand %p2337_p4, %p2331_p0 }
  0x81   : > { %2341 = shalt.err (!%p2338_p6)
}
  0x82   : > { %2087 = dma.hbm_to_vmem [thread:$0]  (!%p2846_p9), %s3455_s8, 16, %s442_s26, [#allocation17]  }
  0x83   : > { %s2342_s20 = scalar_lea.hbm %s3457_s10, 16 }
  0x84   : > { %p2343_p2 = scmp.ne.s32.totalorder %s3457_s10, %s2342_s20  ;;  %p2349_p6 = scmp.lt.u32.totalorder %s2342_s20, %s3457_s10 }
  0x86   : > { %p2345_p3 = pnand %p2343_p2, %p2860_p11 }
  0x88   : > { %p2346_p4 = pneg %p2345_p3 }
  0x8a   : > { %p2351_p5 = pnand %p2349_p6, %p2346_p4 }
  0x8c   : > { %2354 = shalt.err (!%p2351_p5)
}
  0x8d   : > { %s2355_s18 = scalar_lea.vmem %s466_s19, 16  ;;  %s2362_s26 = scalar_lea.vmem %s466_s19, 32 }
  0x8e   : > { %p2356_p8 = scmp.ne.s32.totalorder %s466_s19, %s2355_s18  ;;  %p2363_p13 = scmp.lt.s32.totalorder %s466_s19, %s466_s19 }
  0x8f   : > { %p2364_p0 = scmp.lt.s32.totalorder %s2362_s26, %s2355_s18 }
  0x90   : > { %p2358_p10 = pnand %p2356_p8, %p2860_p11 }
  0x91   : > { %p2365_p1 = por %p2364_p0, %p2363_p13 }
  0x92   : > { %p2359_p12 = pneg %p2358_p10 }
  0x94   : > { %p2366_p7 = pnand %p2365_p1, %p2359_p12 }
  0x96   : > { %2369 = shalt.err (!%p2366_p7)
}
  0x97   : > { %2093 = dma.hbm_to_vmem [thread:$0]  (!%p2846_p9), %s3457_s10, 16, %s466_s19, [#allocation20]  }
  0x98   : > { %s2702_s22 = smov [#allocation9]   ;;  %s2703_s17 = smov [#allocation12]  }
  0x99   : > { %s382_s29 = sshll.u32 %s2702_s22, 4  ;;  %s405_s20 = sshll.u32 %s2703_s17, 4  ;;  %s383_s29 = int_to_ptr.vmem [resolvable:$true] %s382_s29  ;;  %s406_s20 = int_to_ptr.vmem [resolvable:$true] %s405_s20 }
  0x9a   : > { %s3486_s3 = sld [smem:[#allocation40_spill]] }
  0xa0   : > { %s2370_s13 = scalar_lea.hbm %s3486_s3, 16 }
  0xa1   : > { %p2371_p2 = scmp.ne.s32.totalorder %s3486_s3, %s2370_s13  ;;  %p2377_p6 = scmp.lt.u32.totalorder %s2370_s13, %s3486_s3 }
  0xa3   : > { %p2373_p3 = pnand %p2371_p2, %p2860_p11 }
  0xa5   : > { %p2374_p4 = pneg %p2373_p3 }
  0xa7   : > { %p2379_p5 = pnand %p2377_p6, %p2374_p4 }
  0xa9   : > { %2382 = shalt.err (!%p2379_p5)
}
  0xaa   : > { %s2383_s19 = scalar_lea.vmem %s383_s29, 16  ;;  %s2390_s14 = scalar_lea.vmem %s383_s29, 32 }
  0xab   : > { %p2384_p8 = scmp.ne.s32.totalorder %s383_s29, %s2383_s19  ;;  %p2391_p13 = scmp.lt.s32.totalorder %s383_s29, %s383_s29 }
  0xac   : > { %p2392_p0 = scmp.lt.s32.totalorder %s2390_s14, %s2383_s19 }
  0xad   : > { %p2386_p10 = pnand %p2384_p8, %p2860_p11 }
  0xae   : > { %p2393_p1 = por %p2392_p0, %p2391_p13 }
  0xaf   : > { %p2387_p12 = pneg %p2386_p10 }
  0xb1   : > { %p2394_p7 = pnand %p2393_p1, %p2387_p12 }
  0xb3   : > { %2397 = shalt.err (!%p2394_p7)
}
  0xb4   : > { %2072 = dma.hbm_to_vmem [thread:$0]  (!%p2846_p9), %s3486_s3, 16, %s383_s29, [#allocation8]  }
  0xb5   : > { %s3487_s5 = sld [smem:[#allocation42_spill]] }
  0xbb   : > { %s2398_s13 = scalar_lea.hbm %s3487_s5, 256 }
  0xbc   : > { %p2399_p2 = scmp.ne.s32.totalorder %s3487_s5, %s2398_s13  ;;  %p2405_p6 = scmp.lt.u32.totalorder %s2398_s13, %s3487_s5 }
  0xbe   : > { %p2401_p3 = pnand %p2399_p2, %p2860_p11 }
  0xc0   : > { %p2402_p4 = pneg %p2401_p3 }
  0xc2   : > { %p2407_p5 = pnand %p2405_p6, %p2402_p4 }
  0xc4   : > { %2410 = shalt.err (!%p2407_p5)
}
  0xc5   : > { %s2411_s19 = scalar_lea.vmem %s406_s20, 256  ;;  %p2419_p13 = scmp.lt.s32.totalorder %s406_s20, %s406_s20 }
  0xc6   : > { %p2412_p8 = scmp.ne.s32.totalorder %s406_s20, %s2411_s19  ;;  %p2420_p0 = scmp.lt.s32.totalorder %s2411_s19, %s2411_s19 }
  0xc8   : > { %p2414_p10 = pnand %p2412_p8, %p2860_p11  ;;  %p2421_p1 = por %p2420_p0, %p2419_p13 }
  0xca   : > { %p2415_p12 = pneg %p2414_p10 }
  0xcc   : > { %p2422_p7 = pnand %p2421_p1, %p2415_p12 }
  0xce   : > { %2425 = shalt.err (!%p2422_p7)
}
  0xcf   : > { %s3488_s29 = smov 4   ;;  %s3489_s14 = smov 64  }
  0xd0   : > { %2078 = dma.hbm_to_vmem [thread:$0]  (!%p2846_p9), %s3487_s5, 256, %s406_s20, [#allocation11], %s3489_s14, %s3489_s14, %s3488_s29  }
  0xd1   : > { %s2704_s27 = smov [#allocation15]   ;;  %s2705_s13 = smov [#allocation18]  }
  0xd2   : > { %s430_s15 = sshll.u32 %s2704_s27, 4  ;;  %s451_s2 = sshll.u32 %s2705_s13, 4  ;;  %s431_s15 = int_to_ptr.vmem [resolvable:$true] %s430_s15  ;;  %s452_s2 = int_to_ptr.vmem [resolvable:$true] %s451_s2 }
  0xd3   : > { %s2426_s21 = scalar_lea.hbm %s3454_s7, 16 }
  0xd4   : > { %p2427_p2 = scmp.ne.s32.totalorder %s3454_s7, %s2426_s21  ;;  %p2433_p6 = scmp.lt.u32.totalorder %s2426_s21, %s3454_s7 }
  0xd6   : > { %p2429_p3 = pnand %p2427_p2, %p2860_p11 }
  0xd8   : > { %p2430_p4 = pneg %p2429_p3 }
  0xda   : > { %p2435_p5 = pnand %p2433_p6, %p2430_p4 }
  0xdc   : > { %2438 = shalt.err (!%p2435_p5)
}
  0xdd   : > { %s2439_s20 = scalar_lea.vmem %s431_s15, 16  ;;  %s2446_s17 = scalar_lea.vmem %s431_s15, 32 }
  0xde   : > { %p2440_p8 = scmp.ne.s32.totalorder %s431_s15, %s2439_s20  ;;  %p2447_p13 = scmp.lt.s32.totalorder %s431_s15, %s431_s15 }
  0xdf   : > { %p2448_p0 = scmp.lt.s32.totalorder %s2446_s17, %s2439_s20 }
  0xe0   : > { %p2442_p10 = pnand %p2440_p8, %p2860_p11 }
  0xe1   : > { %p2449_p1 = por %p2448_p0, %p2447_p13 }
  0xe2   : > { %p2443_p12 = pneg %p2442_p10 }
  0xe4   : > { %p2450_p7 = pnand %p2449_p1, %p2443_p12 }
  0xe6   : > { %2453 = shalt.err (!%p2450_p7)
}
  0xe7   : > { %2084 = dma.hbm_to_vmem [thread:$0]  (!%p2846_p9), %s3454_s7, 16, %s431_s15, [#allocation14]  }
  0xe8   : > { %s2454_s18 = scalar_lea.hbm %s3456_s9, 256 }
  0xe9   : > { %p2455_p2 = scmp.ne.s32.totalorder %s3456_s9, %s2454_s18  ;;  %p2461_p6 = scmp.lt.u32.totalorder %s2454_s18, %s3456_s9 }
  0xeb   : > { %p2457_p3 = pnand %p2455_p2, %p2860_p11 }
  0xed   : > { %p2458_p4 = pneg %p2457_p3 }
  0xef   : > { %p2463_p5 = pnand %p2461_p6, %p2458_p4 }
  0xf1   : > { %2466 = shalt.err (!%p2463_p5)
}
  0xf2   : > { %s2467_s20 = scalar_lea.vmem %s452_s2, 256  ;;  %p2475_p13 = scmp.lt.s32.totalorder %s452_s2, %s452_s2 }
  0xf3   : > { %p2468_p8 = scmp.ne.s32.totalorder %s452_s2, %s2467_s20  ;;  %p2476_p0 = scmp.lt.s32.totalorder %s2467_s20, %s2467_s20 }
  0xf5   : > { %p2470_p10 = pnand %p2468_p8, %p2860_p11  ;;  %p2477_p1 = por %p2476_p0, %p2475_p13 }
  0xf7   : > { %p2471_p12 = pneg %p2470_p10 }
  0xf9   : > { %p2478_p7 = pnand %p2477_p1, %p2471_p12 }
  0xfb   : > { %2481 = shalt.err (!%p2478_p7)
}
  0xfc   : > { %2090 = dma.hbm_to_vmem [thread:$0]  (!%p2846_p9), %s3456_s9, 256, %s452_s2, [#allocation17], %s3489_s14, %s3489_s14, %s3488_s29  }
  0xfd   : > { %s2706_s3 = smov [#allocation21]   ;;  %s2707_s4 = smov [#allocation22]  }
  0xfe   : > { %s475_s27 = sshll.u32 %s2706_s3, 4  ;;  %s489_s13 = sshll.u32 %s2707_s4, 4  ;;  %s476_s27 = int_to_ptr.vmem [resolvable:$true] %s475_s27  ;;  %s490_s13 = int_to_ptr.vmem [resolvable:$true] %s489_s13 }
  0xff   : > { %s2482_s21 = scalar_lea.hbm %s3458_s11, 512 }
 0x100   : > { %p2483_p2 = scmp.ne.s32.totalorder %s3458_s11, %s2482_s21  ;;  %p2489_p6 = scmp.lt.u32.totalorder %s2482_s21, %s3458_s11 }
 0x102   : > { %p2485_p3 = pnand %p2483_p2, %p2860_p11 }
 0x104   : > { %p2486_p4 = pneg %p2485_p3 }
 0x106   : > { %p2491_p5 = pnand %p2489_p6, %p2486_p4 }
 0x108   : > { %2494 = shalt.err (!%p2491_p5)
}
 0x109   : > { %s2495_s2 = scalar_lea.vmem %s476_s27, 512  ;;  %p2503_p13 = scmp.lt.s32.totalorder %s476_s27, %s476_s27 }
 0x10a   : > { %p2496_p8 = scmp.ne.s32.totalorder %s476_s27, %s2495_s2  ;;  %p2504_p0 = scmp.lt.s32.totalorder %s2495_s2, %s2495_s2 }
 0x10c   : > { %p2498_p10 = pnand %p2496_p8, %p2860_p11  ;;  %p2505_p1 = por %p2504_p0, %p2503_p13 }
 0x10e   : > { %p2499_p12 = pneg %p2498_p10 }
 0x110   : > { %p2506_p7 = pnand %p2505_p1, %p2499_p12 }
 0x112   : > { %2509 = shalt.err (!%p2506_p7)
}
 0x113   : > { %2096 = dma.hbm_to_vmem [thread:$0]  (!%p2846_p9), %s3458_s11, 512, %s476_s27, [#allocation20], %s3489_s14, %s3489_s14, %s3488_s29  }
 0x114   : > { %s2510_s26 = scalar_lea.hbm %s3459_s12, 16 }
 0x115   : > { %p2511_p2 = scmp.ne.s32.totalorder %s3459_s12, %s2510_s26  ;;  %p2517_p6 = scmp.lt.u32.totalorder %s2510_s26, %s3459_s12 }
 0x117   : > { %p2513_p3 = pnand %p2511_p2, %p2860_p11 }
 0x119   : > { %p2514_p4 = pneg %p2513_p3 }
 0x11b   : > { %p2519_p5 = pnand %p2517_p6, %p2514_p4 }
 0x11d   : > { %2522 = shalt.err (!%p2519_p5)
}
 0x11e   : > { %s2523_s15 = scalar_lea.vmem %s490_s13, 16  ;;  %s2530_s29 = scalar_lea.vmem %s490_s13, 32 }
 0x11f   : > { %p2524_p8 = scmp.ne.s32.totalorder %s490_s13, %s2523_s15  ;;  %p2531_p13 = scmp.lt.s32.totalorder %s490_s13, %s490_s13 }
 0x120   : > { %p2532_p0 = scmp.lt.s32.totalorder %s2530_s29, %s2523_s15 }
 0x121   : > { %p2526_p10 = pnand %p2524_p8, %p2860_p11 }
 0x122   : > { %p2533_p1 = por %p2532_p0, %p2531_p13 }
 0x123   : > { %p2527_p12 = pneg %p2526_p10 }
 0x125   : > { %p2534_p7 = pnand %p2533_p1, %p2527_p12 }
 0x127   : > { %2537 = shalt.err (!%p2534_p7)
}
 0x128   : > { %2099 = dma.hbm_to_vmem [thread:$0]  (!%p2846_p9), %s3459_s12, 16, %s490_s13, [#allocation23]  }
 0x129   : > { %s1812_s30 = sadd.s32 4294967294, %s2692_s25   ;;  %s3087_s16 = sadd.s32 1, %s2692_s25  }
 0x12a   : > { %s51_s2 = sadd.s32 1, %s2688_s0  ;;  %s48_s17 = ssub.s32 %s2692_s25, %s3087_s16 }
 0x12b   : > { %p58_p11 = scmp.ne.s32.totalorder %s2688_s0, %s2684_s24  ;;  %p49_p2 = scmp.eq.s32.totalorder %s48_s17, 0 }
 0x12c   : > { %p59_p3 = scmp.eq.s32.totalorder %s2692_s25, 0  ;;  %p64_p4 = scmp.ne.s32.totalorder %s2684_s24, %s2680_s23 }
 0x12d   : > { %p319_p6 = scmp.eq.s32.totalorder %s2828_s28, 1  ;;  %p3490_p8 = scmp.eq.s32.totalorder %s2828_s28, 0 }
 0x12e   : > { %s3099_s3 = scalar_select %p49_p2, %s2688_s0, %s51_s2  }
 0x12f   : > { %p60_p5 = por %p59_p3, %p58_p11  ;;  %p3103_p10 = por %p3490_p8, %p64_p4 }
 0x130   : > { %p3107_p9 = por %p319_p6, %p58_p11  ;;  %p325_p12 = scmp.eq.s32.totalorder %s1812_s30, 1 }
 0x131   : > { %p2122_p13 = scmp.lt.s32.totalorder %s2692_s25, 2  ;;  %s500_s18 = sand.u32 1, %s2688_s0  }
 0x132   : > { %s3492_s13 = scalar_select %p3107_p9, 1, 0 }
 0x133   : > { %p3113_p0 = por %p325_p12, %p64_p4  ;;  %s1826_s21 = sshll.u32 %s500_s18, 3 }
 0x134   : > { %s1827_s19 = sshll.u32 %s2692_s25, 7  ;;  %s3494_s1 = sld [smem:[#allocation38_spill]] }
 0x135   : > { %s3493_s26 = scalar_select %p3113_p0, 1, 0 }
 0x136   : > { %s504_s29 = scalar_lea.vmem [#allocation4], %s1826_s21  ;;  %p3123_p1 = pnand %p2122_p13, %p60_p5 }
 0x137   : > { %s511_s14 = sshll.u32 %s504_s29, 4  ;;  %s501_s30 = scalar_lea.sflag [#allocation5], %s500_s18  ;;  %s3127_s14 = int_to_ptr.vmem [resolvable:$true] %s511_s14 }
 0x138   : > { %p2540_p11 = pneg %p3123_p1 }
 0x13a   : > { %s3121_s15 = scalar_lea.hbm %s3494_s1, %s1827_s19  ;;  %s2543_s19 = scalar_lea.hbm %s3494_s1, 256 }
 0x13b   : > { %s2538_s2 = scalar_lea.hbm %s3121_s15, 128  ;;  %p2544_p4 = scmp.lt.u32.totalorder %s3121_s15, %s3494_s1 }
 0x13c   : > { %p2539_p7 = scmp.ne.s32.totalorder %s3121_s15, %s2538_s2  ;;  %p2545_p6 = scmp.lt.u32.totalorder %s2543_s19, %s2538_s2 }
 0x13d   : > { %p2547_p8 = scmp.lt.u32.totalorder %s2538_s2, %s3121_s15 }
 0x13e   : > { %p2541_p2 = pnand %p2540_p11, %p2539_p7  ;;  %p2546_p5 = por %p2545_p6, %p2544_p4 }
 0x140   : > { %p2542_p3 = pneg %p2541_p2  ;;  %p2548_p12 = por %p2547_p8, %p2546_p5 }
 0x142   : > { %p2549_p13 = pnand %p2548_p12, %p2542_p3 }
 0x144   : > { %2552 = shalt.err (!%p2549_p13)
}
 0x145   : > { %s2553_s18 = scalar_lea.vmem %s3127_s14, 128  ;;  %s2708_s29 = smov [#allocation4]  }
 0x146   : > { %p2554_p7 = scmp.ne.s32.totalorder %s3127_s14, %s2553_s18  ;;  %s2558_s17 = sshll.u32 %s2708_s29, 4  ;;  %s2559_s17 = int_to_ptr.vmem [resolvable:$false] %s2558_s17 }
 0x147   : > { %s2560_s21 = scalar_lea.vmem %s2559_s17, 256  ;;  %p2561_p9 = scmp.lt.s32.totalorder %s3127_s14, %s2559_s17 }
 0x148   : > { %p2556_p2 = pnand %p2554_p7, %p2540_p11  ;;  %p2562_p4 = scmp.lt.s32.totalorder %s2560_s21, %s2553_s18 }
 0x14a   : > { %p2557_p0 = pneg %p2556_p2  ;;  %p2563_p6 = por %p2562_p4, %p2561_p9 }
 0x14c   : > { %p2564_p5 = pnand %p2563_p6, %p2557_p0 }
 0x14e   : > { %2567 = shalt.err (!%p2564_p5)
}
 0x14f   : > { %2103 = dma.hbm_to_vmem [thread:$0]  (!%p3123_p1), %s3121_s15, 128, %s3127_s14, %s501_s30  }
 0x150   : > { %s3496_s2 = sld [smem:[#allocation37_spill]] }
 0x156   : > { %p3497_p3 = scmp.ne.s32.totalorder %s3496_s2, 0 }
 0x157   : > { %s3157_s19 = sand.u32 (!%p3497_p3), 1, %s2684_s24  }
 0x158   : > { %520 = sbr.rel (%p3497_p3) target bundleno = 2890 (0xb4a), region = 68  ;;  %s3472_s22 = sshll.u32 (!%p3497_p3), %s3157_s19, 3 }
 0x159   : > { %s523_s20 = scalar_lea.sflag (!%p3497_p3), [#allocation5], %s3157_s19  ;;  %s526_s18 = scalar_lea.vmem (!%p3497_p3), [#allocation4], %s3472_s22 }
 0x15f   : > { %2643 = dma.done.wait (%p3103_p10), %s523_s20, 128  }
 0x160   : > { %2645 = vsyncadd (%p3103_p10), %s523_s20, 4294967168  ;;  %p3498_p9 = scmp.eq.s32.totalorder %s2828_s28, 0 }
 0x162   : > { %2647 = dma.done.wait (%p3498_p9), [#allocation8], 32   ;;  %p3499_p0 = pmov %p3498_p9 }
 0x164   : > { %2649 = vsyncadd (%p3499_p0), [#allocation8], 4294967264  ;;  %p3500_p1 = pmov %p3499_p0 }
 0x165   : > { %p3501_p11 = pmov %p3499_p0 }
 0x166   : > { %2651 = dma.done.wait (%p3500_p1), [#allocation11], 512  }
 0x167   : > { %2653 = vsyncadd (%p3501_p11), [#allocation11], 4294966784  ;;  %p3502_p8 = pmov %p3499_p0 }
 0x168   : > { %p3503_p12 = pmov %p3499_p0 }
 0x169   : > { %2655 = dma.done.wait (%p3502_p8), [#allocation14], 32  }
 0x16a   : > { %2657 = vsyncadd (%p3503_p12), [#allocation14], 4294967264  ;;  %p3504_p10 = pmov %p3499_p0 }
 0x16b   : > { %p3505_p13 = pmov %p3499_p0 }
 0x16c   : > { %2659 = dma.done.wait (%p3504_p10), [#allocation17], 272  }
 0x16d   : > { %2661 = vsyncadd (%p3505_p13), [#allocation17], 4294967024  ;;  %p3506_p7 = pmov %p3499_p0 }
 0x16e   : > { %p3507_p2 = pmov %p3499_p0 }
 0x16f   : > { %2663 = dma.done.wait (%p3506_p7), [#allocation20], 528  }
 0x170   : > { %2665 = vsyncadd (%p3507_p2), [#allocation20], 4294966768  ;;  %p3508_p4 = pmov %p3499_p0 }
 0x171   : > { %p3509_p6 = pmov %p3499_p0 }
 0x172   : > { %2667 = dma.done.wait (%p3508_p4), [#allocation23], 16  }
 0x173   : > { %2669 = vsyncadd (%p3509_p6), [#allocation23], 4294967280  ;;  %vm632_vm0 = vcmask 261120   ;;  %v3191_v0 = vld [vmem:[%s526_s18] sm:$0xff]  ;;  %v2190_v7 = vld [vmem:[#allocation10] sm:$0xff]   ;;  %v2709_v8 = vmov 0.0   ;;  %v621_v36 = vlaneseq }
 0x174   : > { %v633_v1 = vsel %vm632_vm0, %v3191_v0, 0.0  ;;  %1916 = vmatprep.subr.bf16.mxu1 %v2709_v8  ;;  %vm2710_vm1 = vmmov 0   ;;  %v2191_v9 = vld [vmem:[#allocation10 + $0x8] sm:$0xff]   ;;  %1930 = vmatprep.subr.bf16.mxu0 %v2709_v8  ;;  %v1843_v14 = vld [vmem:[#allocation7] ss:$0 sm:$0xff]  ;;  %s2711_s4 = smov 104  }
 0x175   : > { %634 = vadd.xlane.f32.xlu0 %v633_v1  ;;  %1920 = vmatprep.mubr.msk.bf16.mxu1 %vm2710_vm1, %v2709_v8  ;;  %v1844_v16 = vld [vmem:[#allocation9] ss:$0 sm:$0xff]  ;;  %s2712_s15 = smov 120   ;;  %s2713_s14 = smov 112   ;;  %vm731_vm2 = vcmask 64512   ;;  %v3250_v37 = vshrl.u32 %v621_v36, 7 }
 0x176   : > { %1917 = vmatpush3.bf16.msra.mxu1 %v2190_v7  ;;  %1932 = vmatprep.mubr.msk.bf16.mxu0 %vm2710_vm1, %v2709_v8  ;;  %s2714_s27 = smov 96   ;;  %s3248_s30 = sld [smem:[#allocation3 + %s2828_s28]]  ;;  %v624_v38 = vand.u32 127, %v621_v36  ;;  %vm985_vm6 = vcmask 1043456   ;;  %vm1523_vm8 = vcmask 523264  }
 0x177   : > { %1918 = vmatprep.subr.bf16.mxu1 %v2709_v8  ;;  %s2715_s29 = smov 64   ;;  %s1842_s17 = sshll.u32 %s3157_s19, 5 }
 0x178   : > { %vm627_vm4 = vcmp.gt.s32.totalorder %v624_v38, %v3250_v37  ;;  %s3287_s21 = scalar_lea.vmem [#allocation25], %s1842_s17  ;;  %s1880_s2 = sshll.u32 %s2828_s28, 9 }
 0x179   : > { %s1602_s20 = sshll.u32 %s3287_s21, 4  ;;  %p3515_p3 = scmp.ne.s32.totalorder %s3492_s13, 0  ;;  %s3367_s20 = int_to_ptr.vmem [resolvable:$true] %s1602_s20 }
 0x17a   : > { %1919 = vmatpush3.bf16.msra.mxu1 %v2191_v9 }
 0x17b   : > { %1924 = vmatprep.subr.bf16.mxu1 %v2709_v8 }
 0x17c   : > { %v625_v39 = vstv %s3248_s30  ;;  %s2568_s30 = scalar_lea.vmem %s3367_s20, 512 }
 0x17d   : > { %vm626_vm3 = vcmp.ge.s32.totalorder %v624_v38, %v625_v39  ;;  %vm3342_vm7 = vcmp.lt.s32.totalorder %v3250_v37, %v625_v39  ;;  %v2192_v39 = vld [vmem:[#allocation18] sm:$0xff]   ;;  %p2569_p5 = scmp.ne.s32.totalorder %s3367_s20, %s2568_s30 }
 0x17e   : > { %vm3256_vm5 = vmor %vm626_vm3, %vm627_vm4 }
 0x17f   : > { %p2570_p9 = pnand %p2569_p5, %p3515_p3 }
 0x181   : > { %p2571_p0 = pneg %p2570_p9 }
 0x202   : > { %v635_v2 = vpop.xlane.xlu0 %634 }
 0x203   : > { %v637_v3 = vmul.f32 0.03125, %v635_v2 }
 0x205   : > { %v638_v4 = vsub.f32 %v3191_v0, %v637_v3 }
 0x207   : > { %v639_v5 = vmul.f32 %v638_v4, %v638_v4 }
 0x209   : > { %v640_v6 = vsel %vm632_vm0, %v639_v5, 0.0 }
 0x20a   : > { %641 = vadd.xlane.f32.xlu0 %v640_v6 }
 0x297   : > { %v642_v10 = vpop.xlane.xlu0 %641 }
 0x298   : > { %v643_v11 = vmul.f32 0.03125, %v642_v10 }
 0x29a   : > { %v644_v12 = vadd.f32 1e-06, %v643_v11 }
 0x29c   : > { %2198 = vrsqrt.f32 %v644_v12 }
 0x2a6   : > { %v2199_v13 = vpop.eup %2198 }
 0x2a7   : > { %v646_v15 = vmul.f32 %v2199_v13, %v638_v4 }
 0x2a9   : > { %v653_v17 = vmul.f32 %v1843_v14, %v646_v15 }
 0x2ab   : > { %v660_v18 = vadd.f32 %v1844_v16, %v653_v17 }
 0x2ad   : > { %v661_v19 = vpack.c.bf16 %v660_v18, %v660_v18 }
 0x2af   : > { %1921 = vmatmul.mubr.msk.bf16.vlgmr.msra.gmra.mrb[0].mxu1 %vm632_vm0, %v661_v19 }
 0x2b0   : > { %1926 = vmatprep.mubr.msk.bf16.mxu1 %vm2710_vm1, %v2709_v8 }
 0x382   : > { %v715_v20 = vpop.f32.mrb[0].mxu1 }
 0x383   : > { %v3208_v21 = vpack.c.bf16 %v715_v20, %v715_v20  ;;  %v1922_v22 = vpop.f32.mrb[1].mxu1 }
 0x384   : > { %v718_v23 = vpop.f32.mrb[2].mxu1 }
 0x385   : > { %727 = vrot.lane.b32.xlu0 %v3208_v21, %s2711_s4  ;;  %723 = vrot.lane.b32.xlu1 %v3208_v21, %s2712_s15  ;;  %v1923_v24 = vpop.f32.mrb[3].mxu1  ;;  %s3514_s15 = sld [smem:[#allocation44_spill]] }
 0x389   : > { %725 = vrot.lane.b32.xlu1 %v3208_v21, %s2713_s14 }
 0x38b   : > { %s3365_s14 = scalar_lea.hbm %s3514_s15, %s1880_s2 }
 0x38d   : > { %729 = vrot.lane.b32.xlu1 %v3208_v21, %s2714_s27 }
 0x3f7   : > { %v3214_v25 = vpop.permute.xlu1 %723  ;;  %v3220_v27 = vpop.permute.xlu0 %727 }
 0x3f8   : > { %778 = vrot.lane.b32.xlu1 %v3214_v25, %s2714_s27 }
 0x3fb   : > { %v3217_v26 = vpop.permute.xlu1 %725 }
 0x3fc   : > { %826 = vrot.lane.b32.xlu1 %v3217_v26, %s2714_s27 }
 0x3ff   : > { %v730_v28 = vpop.permute.xlu1 %729 }
 0x400   : > { %v736_v29 = vsel %vm731_vm2, %v730_v28, 0  ;;  %874 = vrot.lane.b32.xlu1 %v3220_v27, %s2714_s27  ;;  %s1576_s27 = scalar_lea.sflag [#allocation26], %s3157_s19 }
 0x401   : > { %1925 = vmatpush3.bf16.xpose.msra.mxu1 %v736_v29 }
 0x402   : > { %1936 = vmatprep.subr.bf16.mxu1 %v2709_v8 }
 0x408   : > { %1927 = vmatmul.mubr.msk.bf16.vlgmr.msra.gmra.mrb[4].mxu1 %vm731_vm2, %v3208_v21 }
 0x409   : > { %1938 = vmatprep.mubr.msk.bf16.mxu1 %vm2710_vm1, %v2709_v8 }
 0x46a   : > { %v779_v30 = vpop.permute.xlu1 %778 }
 0x46b   : > { %v784_v31 = vsel %vm731_vm2, %v779_v30, 0 }
 0x46c   : > { %1931 = vmatpush3.bf16.xpose.msra.mxu0 %v784_v31 }
 0x46d   : > { %1942 = vmatprep.subr.bf16.mxu0 %v2709_v8 }
 0x46e   : > { %v827_v32 = vpop.permute.xlu1 %826 }
 0x46f   : > { %v832_v33 = vsel %vm731_vm2, %v827_v32, 0 }
 0x470   : > { %1937 = vmatpush3.bf16.xpose.msra.mxu1 %v832_v33 }
 0x471   : > { %1948 = vmatprep.subr.bf16.mxu1 %v2709_v8 }
 0x472   : > { %v875_v34 = vpop.permute.xlu1 %874 }
 0x473   : > { %v880_v35 = vsel %vm731_vm2, %v875_v34, 0  ;;  %1933 = vmatmul.mubr.msk.bf16.vlgmr.msra.gmra.mrb[0].mxu0 %vm731_vm2, %v3214_v25 }
 0x474   : > { %1943 = vmatpush3.bf16.xpose.msra.mxu0 %v880_v35  ;;  %1944 = vmatprep.mubr.msk.bf16.mxu0 %vm2710_vm1, %v2709_v8 }
 0x475   : > { %1954 = vmatprep.subr.bf16.mxu0 %v2709_v8 }
 0x477   : > { %1939 = vmatmul.mubr.msk.bf16.vlgmr.msra.gmra.mrb[8].mxu1 %vm731_vm2, %v3217_v26 }
 0x478   : > { %1950 = vmatprep.mubr.msk.bf16.mxu1 %vm2710_vm1, %v2709_v8 }
 0x47b   : > { %1945 = vmatmul.mubr.msk.bf16.vlgmr.msra.gmra.mrb[4].mxu0 %vm731_vm2, %v3220_v27 }
 0x47c   : > { %1956 = vmatprep.mubr.msk.bf16.mxu0 %vm2710_vm1, %v2709_v8 }
 0x4db   : > { %v772_v41 = vpop.f32.mrb[4].mxu1 }
 0x4dc   : > { %v924_v42 = vsel %vm3256_vm5, -1e+09, %v772_v41  ;;  %v1928_v43 = vpop.f32.mrb[5].mxu1 }
 0x4dd   : > { %v775_v44 = vpop.f32.mrb[6].mxu1  ;;  %v928_v45 = vsel %vm731_vm2, %v924_v42, -inf  ;;  %v1177_v43 = vld [vmem:[#allocation12] sm:$0xf] }
 0x4de   : > { %v1929_v46 = vpop.f32.mrb[7].mxu1  ;;  %929 = vmax.xlane.f32.xlu1 %v928_v45 }
 0x546   : > { %v820_v47 = vpop.f32.mrb[0].mxu0 }
 0x547   : > { %v925_v48 = vsel %vm3256_vm5, -1e+09, %v820_v47  ;;  %v1934_v49 = vpop.f32.mrb[1].mxu0  ;;  %v1185_v47 = vsel %vm985_vm6, %v1177_v43, 0 }
 0x548   : > { %v823_v50 = vpop.f32.mrb[2].mxu0  ;;  %v931_v51 = vsel %vm731_vm2, %v925_v48, -inf }
 0x549   : > { %v1935_v52 = vpop.f32.mrb[3].mxu0  ;;  %932 = vmax.xlane.f32.xlu0 %v931_v51  ;;  %v1178_v51 = vld [vmem:[#allocation12 + $0x4] sm:$0xf] }
 0x54a   : > { %v868_v53 = vpop.f32.mrb[8].mxu1  ;;  %v1231_v52 = vsel %vm985_vm6, %v1178_v51, 0 }
 0x54b   : > { %v926_v54 = vsel %vm3256_vm5, -1e+09, %v868_v53  ;;  %v1940_v55 = vpop.f32.mrb[9].mxu1  ;;  %v1179_v53 = vld [vmem:[#allocation12 + $0x8] sm:$0xf] }
 0x54c   : > { %v871_v56 = vpop.f32.mrb[10].mxu1  ;;  %v934_v57 = vsel %vm731_vm2, %v926_v54, -inf }
 0x54d   : > { %v1941_v58 = vpop.f32.mrb[11].mxu1  ;;  %935 = vmax.xlane.f32.xlu1 %v934_v57  ;;  %v1277_v57 = vsel %vm985_vm6, %v1179_v53, 0 }
 0x54e   : > { %v916_v59 = vpop.f32.mrb[4].mxu0 }
 0x54f   : > { %v927_v60 = vsel %vm3256_vm5, -1e+09, %v916_v59  ;;  %v1946_v61 = vpop.f32.mrb[5].mxu0 }
 0x550   : > { %v919_v62 = vpop.f32.mrb[6].mxu0  ;;  %v937_v63 = vsel %vm731_vm2, %v927_v60, -inf }
 0x551   : > { %v1947_v1 = vpop.f32.mrb[7].mxu0  ;;  %938 = vmax.xlane.f32.xlu0 %v937_v63 }
 0x55e   : > { %980 = vrot.lane.b32.xlu1 %v3208_v21, %s2715_s29 }
 0x56b   : > { %v930_v2 = vpop.xlane.xlu1 %929 }
 0x56c   : > { %v940_v3 = vsub.f32 %v924_v42, %v930_v2 }
 0x56e   : > { %v944_v4 = vmul.f32 1.442695, %v940_v3 }
 0x570   : > { %2200 = vpow2.f32 %v944_v4 }
 0x57a   : > { %v2201_v5 = vpop.eup %2200 }
 0x57b   : > { %v952_v6 = vsel %vm731_vm2, %v2201_v5, 0.0 }
 0x582   : > { %953 = vadd.xlane.f32.xlu1 %v952_v6 }
 0x5d6   : > { %v933_v7 = vpop.xlane.xlu0 %932 }
 0x5d7   : > { %v941_v9 = vsub.f32 %v925_v48, %v933_v7 }
 0x5d9   : > { %v946_v10 = vmul.f32 1.442695, %v941_v9 }
 0x5da   : > { %v936_v11 = vpop.xlane.xlu1 %935 }
 0x5db   : > { %2202 = vpow2.f32 %v946_v10  ;;  %v942_v12 = vsub.f32 %v926_v54, %v936_v11 }
 0x5dd   : > { %v948_v13 = vmul.f32 1.442695, %v942_v12 }
 0x5de   : > { %v939_v14 = vpop.xlane.xlu0 %938  ;;  %v981_v15 = vpop.permute.xlu1 %980 }
 0x5df   : > { %2204 = vpow2.f32 %v948_v13  ;;  %v943_v16 = vsub.f32 %v927_v60, %v939_v14  ;;  %v987_v17 = vsel %vm985_vm6, %v981_v15, 0  ;;  %v1180_v60 = vld [vmem:[#allocation12 + $0xc] sm:$0xf] }
 0x5e0   : > { %1949 = vmatpush3.bf16.msra.mxu1 %v987_v17  ;;  %v1323_v1 = vsel %vm985_vm6, %v1180_v60, 0  ;;  %v2194_v60 = vld [vmem:[#allocation21] sm:$0xff]  }
 0x5e1   : > { %v950_v18 = vmul.f32 1.442695, %v943_v16  ;;  %1960 = vmatprep.subr.bf16.mxu1 %v2709_v8 }
 0x5e3   : > { %2206 = vpow2.f32 %v950_v18 }
 0x5e5   : > { %v2203_v19 = vpop.eup %2202 }
 0x5e6   : > { %v955_v20 = vsel %vm731_vm2, %v2203_v19, 0.0 }
 0x5e7   : > { %956 = vadd.xlane.f32.xlu0 %v955_v20 }
 0x5e9   : > { %v2205_v21 = vpop.eup %2204 }
 0x5ea   : > { %v958_v22 = vsel %vm731_vm2, %v2205_v21, 0.0 }
 0x5eb   : > { %959 = vadd.xlane.f32.xlu1 %v958_v22 }
 0x5ed   : > { %v2207_v23 = vpop.eup %2206 }
 0x5ee   : > { %v961_v24 = vsel %vm731_vm2, %v2207_v23, 0.0 }
 0x5ef   : > { %962 = vadd.xlane.f32.xlu0 %v961_v24 }
 0x5fc   : > { %1077 = vrot.lane.b32.xlu1 %v3217_v26, %s2715_s29 }
 0x600   : > { %1125 = vrot.lane.b32.xlu1 %v3220_v27, %s2715_s29 }
 0x605   : > { %1029 = vrot.lane.b32.xlu0 %v3214_v25, %s2715_s29  ;;  %s2716_s29 = smov [#allocation25]  }
 0x606   : > { %s2572_s17 = sshll.u32 %s2716_s29, 4  ;;  %s2573_s17 = int_to_ptr.vmem [resolvable:$false] %s2572_s17 }
 0x607   : > { %p2575_p1 = scmp.lt.s32.totalorder %s3367_s20, %s2573_s17 }
 0x60f   : > { %v954_v28 = vpop.xlane.xlu1 %953 }
 0x610   : > { %2208 = vrcp.f32 %v954_v28 }
 0x61a   : > { %v2209_v29 = vpop.eup %2208 }
 0x61b   : > { %v968_v30 = vmul.f32 %v2209_v29, %v2201_v5 }
 0x61d   : > { %972 = vst.msk [vmem:[%s3287_s21] sm:$0xff] %vm731_vm2, %v968_v30  ;;  %v976_v31 = vpack.c.bf16 %v968_v30, %v968_v30 }
 0x61f   : > { %1951 = vmatmul.mubr.msk.bf16.vlgmr.msra.gmra.mrb[12].mxu1 %vm731_vm2, %v976_v31 }
 0x620   : > { %1962 = vmatprep.mubr.msk.bf16.mxu1 %vm2710_vm1, %v2709_v8 }
 0x674   : > { %v957_v26 = vpop.xlane.xlu0 %956 }
 0x675   : > { %2210 = vrcp.f32 %v957_v26 }
 0x678   : > { %v960_v25 = vpop.xlane.xlu1 %959 }
 0x679   : > { %2212 = vrcp.f32 %v960_v25 }
 0x67c   : > { %v963_v27 = vpop.xlane.xlu0 %962  ;;  %v1078_v32 = vpop.permute.xlu1 %1077 }
 0x67d   : > { %2214 = vrcp.f32 %v963_v27  ;;  %v1083_v33 = vsel %vm985_vm6, %v1078_v32, 0 }
 0x67e   : > { %1961 = vmatpush3.bf16.msra.mxu1 %v1083_v33 }
 0x67f   : > { %v2211_v34 = vpop.eup %2210  ;;  %1972 = vmatprep.subr.bf16.mxu1 %v2709_v8 }
 0x680   : > { %v969_v35 = vmul.f32 %v2211_v34, %v2203_v19  ;;  %v1030_v36 = vpop.permute.xlu0 %1029  ;;  %v1126_v40 = vpop.permute.xlu1 %1125  ;;  %v1860_v34 = vld [vmem:[#allocation13] ss:$0 sm:$0xff] }
 0x681   : > { %v1035_v38 = vsel %vm985_vm6, %v1030_v36, 0  ;;  %v1131_v45 = vsel %vm985_vm6, %v1126_v40, 0 }
 0x682   : > { %973 = vst.msk [vmem:[%s3287_s21 + $0x8] sm:$0xff] %vm731_vm2, %v969_v35  ;;  %1955 = vmatpush3.bf16.msra.mxu0 %v1035_v38  ;;  %v977_v41 = vpack.c.bf16 %v969_v35, %v969_v35 }
 0x683   : > { %v2213_v42 = vpop.eup %2212  ;;  %1966 = vmatprep.subr.bf16.mxu0 %v2709_v8 }
 0x684   : > { %v970_v44 = vmul.f32 %v2213_v42, %v2205_v21 }
 0x685   : > { %1957 = vmatmul.mubr.msk.bf16.vlgmr.msra.gmra.mrb[8].mxu0 %vm731_vm2, %v977_v41 }
 0x686   : > { %974 = vst.msk [vmem:[%s3287_s21 + $0x10] sm:$0xff] %vm731_vm2, %v970_v44  ;;  %1967 = vmatpush3.bf16.msra.mxu0 %v1131_v45  ;;  %v978_v46 = vpack.c.bf16 %v970_v44, %v970_v44  ;;  %1968 = vmatprep.mubr.msk.bf16.mxu0 %vm2710_vm1, %v2709_v8 }
 0x687   : > { %v2215_v48 = vpop.eup %2214  ;;  %1978 = vmatprep.subr.bf16.mxu0 %v2709_v8 }
 0x688   : > { %v971_v49 = vmul.f32 %v2215_v48, %v2207_v23  ;;  %1963 = vmatmul.mubr.msk.bf16.vlgmr.msra.gmra.mrb[16].mxu1 %vm731_vm2, %v978_v46 }
 0x689   : > { %1973 = vmatpush3.bf16.msra.mxu1 %v1185_v47  ;;  %1974 = vmatprep.mubr.msk.bf16.mxu1 %vm2710_vm1, %v2709_v8 }
 0x68a   : > { %975 = vst.msk [vmem:[%s3287_s21 + $0x18] sm:$0xff] %vm731_vm2, %v971_v49  ;;  %v979_v50 = vpack.c.bf16 %v971_v49, %v971_v49  ;;  %1984 = vmatprep.subr.bf16.mxu1 %v2709_v8  ;;  %s2574_s21 = scalar_lea.vmem %s2573_s17, 1024 }
 0x68b   : > { %p2576_p11 = scmp.lt.s32.totalorder %s2574_s21, %s2568_s30 }
 0x68d   : > { %1969 = vmatmul.mubr.msk.bf16.vlgmr.msra.gmra.mrb[12].mxu0 %vm731_vm2, %v979_v50  ;;  %p2577_p8 = por %p2576_p11, %p2575_p1 }
 0x68e   : > { %1980 = vmatprep.mubr.msk.bf16.mxu0 %vm2710_vm1, %v2709_v8  ;;  %1979 = vmatpush3.bf16.msra.mxu0 %v1231_v52 }
 0x68f   : > { %1990 = vmatprep.subr.bf16.mxu0 %v2709_v8  ;;  %p2578_p12 = pnand %p2577_p8, %p2571_p0 }
 0x6f2   : > { %v1023_v54 = vpop.f32.mrb[12].mxu1 }
 0x6f3   : > { %v1173_v55 = vpack.c.bf16 %v1023_v54, %v1023_v54  ;;  %v1952_v56 = vpop.f32.mrb[13].mxu1  ;;  %v1861_v54 = vld [vmem:[#allocation15] ss:$0 sm:$0xff] }
 0x6f4   : > { %v1026_v58 = vpop.f32.mrb[14].mxu1  ;;  %v1862_v56 = vld [vmem:[#allocation16] ss:$0 sm:$0xff] }
 0x6f5   : > { %v1953_v59 = vpop.f32.mrb[15].mxu1  ;;  %1975 = vmatmul.mubr.msk.bf16.vlgmr.msra.gmra.mrb[20].mxu1 %vm731_vm2, %v1173_v55 }
 0x6f6   : > { %1985 = vmatpush3.bf16.msra.mxu1 %v1277_v57  ;;  %1986 = vmatprep.mubr.msk.bf16.mxu1 %vm2710_vm1, %v2709_v8 }
 0x6f7   : > { %1996 = vmatprep.subr.bf16.mxu1 %v2709_v8 }
 0x758   : > { %v1071_v61 = vpop.f32.mrb[8].mxu0 }
 0x759   : > { %v1174_v62 = vpack.c.bf16 %v1071_v61, %v1071_v61  ;;  %v1958_v63 = vpop.f32.mrb[9].mxu0  ;;  %v2195_v61 = vld [vmem:[#allocation21 + $0x8] sm:$0xff]  }
 0x75a   : > { %v1074_v2 = vpop.f32.mrb[10].mxu0  ;;  %v2197_v63 = vld [vmem:[#allocation21 + $0x18] sm:$0xff]  }
 0x75b   : > { %v1959_v3 = vpop.f32.mrb[11].mxu0  ;;  %v1119_v4 = vpop.f32.mrb[16].mxu1  ;;  %1981 = vmatmul.mubr.msk.bf16.vlgmr.msra.gmra.mrb[16].mxu0 %vm731_vm2, %v1174_v62  ;;  %v2196_v62 = vld [vmem:[#allocation21 + $0x10] sm:$0xff]  }
 0x75c   : > { %v1175_v5 = vpack.c.bf16 %v1119_v4, %v1119_v4  ;;  %v1964_v6 = vpop.f32.mrb[17].mxu1  ;;  %1991 = vmatpush3.bf16.msra.mxu0 %v1323_v1  ;;  %1992 = vmatprep.mubr.msk.bf16.mxu0 %vm2710_vm1, %v2709_v8  ;;  %v1863_v1 = vld [vmem:[#allocation19] ss:$0 sm:$0xff] }
 0x75d   : > { %v1122_v7 = vpop.f32.mrb[18].mxu1  ;;  %2004 = vmatprep.subr.bf16.mxu0 %v2709_v8 }
 0x75e   : > { %v1965_v9 = vpop.f32.mrb[19].mxu1  ;;  %1987 = vmatmul.mubr.msk.bf16.vlgmr.msra.gmra.mrb[24].mxu1 %vm731_vm2, %v1175_v5 }
 0x75f   : > { %2000 = vmatprep.mubr.msk.bf16.mxu1 %vm2710_vm1, %v2709_v8  ;;  %1997 = vmatpush3.bf16.msra.mxu1 %v2192_v39 }
 0x760   : > { %v1167_v10 = vpop.f32.mrb[12].mxu0  ;;  %1998 = vmatprep.subr.bf16.mxu1 %v2709_v8 }
 0x761   : > { %v1176_v11 = vpack.c.bf16 %v1167_v10, %v1167_v10  ;;  %v1970_v12 = vpop.f32.mrb[13].mxu0 }
 0x762   : > { %v1170_v13 = vpop.f32.mrb[14].mxu0 }
 0x763   : > { %v1971_v14 = vpop.f32.mrb[15].mxu0  ;;  %1993 = vmatmul.mubr.msk.bf16.vlgmr.msra.gmra.mrb[20].mxu0 %vm731_vm2, %v1176_v11 }
 0x764   : > { %2012 = vmatprep.mubr.msk.bf16.mxu0 %vm2710_vm1, %v2709_v8  ;;  %2005 = vmatpush3.bf16.msra.mxu0 %v2194_v60 }
 0x765   : > { %2006 = vmatprep.subr.bf16.mxu0 %v2709_v8 }
 0x768   : > { %2007 = vmatpush3.bf16.msra.mxu0 %v2195_v61 }
 0x769   : > { %2008 = vmatprep.subr.bf16.mxu0 %v2709_v8 }
 0x76c   : > { %2009 = vmatpush3.bf16.msra.mxu0 %v2196_v62 }
 0x76d   : > { %2010 = vmatprep.subr.bf16.mxu0 %v2709_v8 }
 0x770   : > { %2011 = vmatpush3.bf16.msra.mxu0 %v2197_v63 }
 0x7c8   : > { %v1221_v15 = vpop.f32.mrb[20].mxu1 }
 0x7c9   : > { %v1976_v16 = vpop.f32.mrb[21].mxu1  ;;  %v1365_v20 = vsel %vm632_vm0, %v1221_v15, 0.0 }
 0x7ca   : > { %v1224_v17 = vpop.f32.mrb[22].mxu1 }
 0x7cb   : > { %v1977_v18 = vpop.f32.mrb[23].mxu1 }
 0x82e   : > { %v1267_v19 = vpop.f32.mrb[16].mxu0 }
 0x82f   : > { %v1366_v21 = vsel %vm632_vm0, %v1267_v19, 0.0  ;;  %v1982_v22 = vpop.f32.mrb[17].mxu0 }
 0x830   : > { %v1367_v23 = vadd.f32 %v1366_v21, %v1365_v20  ;;  %v1270_v24 = vpop.f32.mrb[18].mxu0 }
 0x831   : > { %v1983_v28 = vpop.f32.mrb[19].mxu0  ;;  %v1313_v29 = vpop.f32.mrb[24].mxu1 }
 0x832   : > { %v1368_v30 = vsel %vm632_vm0, %v1313_v29, 0.0  ;;  %v1988_v31 = vpop.f32.mrb[25].mxu1 }
 0x833   : > { %v1369_v26 = vadd.f32 %v1368_v30, %v1367_v23  ;;  %v1316_v25 = vpop.f32.mrb[26].mxu1 }
 0x834   : > { %v1989_v27 = vpop.f32.mrb[27].mxu1 }
 0x836   : > { %v1359_v32 = vpop.f32.mrb[20].mxu0 }
 0x837   : > { %v1370_v33 = vsel %vm632_vm0, %v1359_v32, 0.0  ;;  %v1994_v35 = vpop.f32.mrb[21].mxu0 }
 0x838   : > { %v1371_v36 = vadd.f32 %v1370_v33, %v1369_v26  ;;  %v1362_v38 = vpop.f32.mrb[22].mxu0 }
 0x839   : > { %v1995_v40 = vpop.f32.mrb[23].mxu0 }
 0x83a   : > { %v1379_v41 = vadd.f32 %v1860_v34, %v1371_v36 }
 0x83c   : > { %v1380_v43 = vadd.f32 %v1379_v41, %v3191_v0  ;;  %v2193_v0 = vld [vmem:[#allocation18 + $0x8] sm:$0xff]  }
 0x83d   : > { %1999 = vmatpush3.bf16.msra.mxu1 %v2193_v0 }
 0x83e   : > { %v3349_v44 = vsel %vm3342_vm7, %v1380_v43, 0.0 }
 0x83f   : > { %v1384_v45 = vsel %vm632_vm0, %v3349_v44, 0.0 }
 0x840   : > { %1385 = vadd.xlane.f32.xlu0 %v1384_v45 }
 0x8cd   : > { %v1386_v46 = vpop.xlane.xlu0 %1385 }
 0x8ce   : > { %v1387_v47 = vmul.f32 0.03125, %v1386_v46 }
 0x8d0   : > { %v1388_v48 = vsub.f32 %v3349_v44, %v1387_v47 }
 0x8d2   : > { %v1389_v49 = vmul.f32 %v1388_v48, %v1388_v48 }
 0x8d4   : > { %v1390_v37 = vsel %vm632_vm0, %v1389_v49, 0.0 }
 0x8d5   : > { %1391 = vadd.xlane.f32.xlu1 %v1390_v37 }
 0x962   : > { %v1392_v50 = vpop.xlane.xlu1 %1391 }
 0x963   : > { %v1393_v51 = vmul.f32 0.03125, %v1392_v50 }
 0x965   : > { %v1394_v52 = vadd.f32 1e-06, %v1393_v51 }
 0x967   : > { %2216 = vrsqrt.f32 %v1394_v52 }
 0x971   : > { %v2217_v53 = vpop.eup %2216 }
 0x972   : > { %v1396_v55 = vmul.f32 %v2217_v53, %v1388_v48 }
 0x974   : > { %v1403_v57 = vmul.f32 %v1861_v54, %v1396_v55 }
 0x976   : > { %v1410_v58 = vadd.f32 %v1862_v56, %v1403_v57 }
 0x978   : > { %v1411_v59 = vpack.c.bf16 %v1410_v58, %v1410_v58 }
 0x97a   : > { %2001 = vmatmul.mubr.msk.bf16.vlgmr.msra.gmra.mrb[28].mxu1 %vm632_vm0, %v1411_v59 }
 0xa4d   : > { %v1472_v2 = vpop.f32.mrb[28].mxu1 }
 0xa4e   : > { %v1473_v3 = vadd.f32 %v1863_v1, %v1472_v2  ;;  %v2002_v4 = vpop.f32.mrb[29].mxu1 }
 0xa4f   : > { %v1475_v5 = vpop.f32.mrb[30].mxu1 }
 0xa50   : > { %v1479_v6 = vmul.f32 0.70710677, %v1473_v3  ;;  %v2003_v7 = vpop.f32.mrb[31].mxu1  ;;  %v1478_v10 = vmul.f32 0.5, %v1473_v3 }
 0xa52   : > { %2218 = verf.f32 %v1479_v6 }
 0xa5c   : > { %v2219_v9 = vpop.eup %2218 }
 0xa5d   : > { %v1481_v11 = vadd.f32 1.0, %v2219_v9 }
 0xa5f   : > { %v1482_v12 = vmul.f32 %v1481_v11, %v1478_v10 }
 0xa61   : > { %v1483_v8 = vpack.c.bf16 %v1482_v12, %v1482_v12 }
 0xa63   : > { %2013 = vmatmul.mubr.msk.bf16.vlgmr.msra.gmra.mrb[24].mxu0 %vm1523_vm8, %v1483_v8 }
 0xa64   : > { %2581 = shalt.err (!%p2578_p12)
}
 0xa65   : > { %s2582_s2 = scalar_lea.hbm %s3365_s14, 512  ;;  %s2586_s29 = scalar_lea.hbm %s3514_s15, 1024 }
 0xa66   : > { %p2583_p10 = scmp.ne.s32.totalorder %s3365_s14, %s2582_s2  ;;  %p2587_p2 = scmp.lt.u32.totalorder %s3365_s14, %s3514_s15 }
 0xa67   : > { %p2588_p4 = scmp.lt.u32.totalorder %s2586_s29, %s2582_s2  ;;  %p2590_p5 = scmp.lt.u32.totalorder %s2582_s2, %s3365_s14 }
 0xa68   : > { %p2584_p13 = pnand %p2583_p10, %p3515_p3 }
 0xa69   : > { %p2589_p6 = por %p2588_p4, %p2587_p2 }
 0xa6a   : > { %p2585_p7 = pneg %p2584_p13 }
 0xa6b   : > { %p2591_p9 = por %p2590_p5, %p2589_p6 }
 0xa6d   : > { %p2592_p0 = pnand %p2591_p9, %p2585_p7 }
 0xa6f   : > { %2595 = shalt.err (!%p2592_p0)
}
 0xa70   : > { %s2717_s30 = smov 128   ;;  %s2718_s21 = smov 8   ;;  %v1867_v13 = vld [vmem:[#allocation22] ss:$0 sm:$0xff] }
 0xa71   : > { %2063 = dma.vmem_to_hbm [thread:$0]  (%p3515_p3), %s3367_s20, 512, %s3365_s14, %s1576_s27, %s2717_s30, %s2717_s30, %s2718_s21  }
 0xa72   : > { %s1875_s22 = sshll.u32 %s2828_s28, 7  ;;  %s3516_s2 = sshll.u32 %s3157_s19, 3 }
 0xa73   : > { %s610_s18 = scalar_lea.vmem [#allocation24], %s3516_s2  ;;  %s3517_s1 = sld [smem:[#allocation43_spill]] }
 0xa74   : > { %s1589_s4 = sshll.u32 %s610_s18, 4  ;;  %s1571_s28 = scalar_lea.sflag [#allocation6], %s3157_s19  ;;  %s3402_s4 = int_to_ptr.vmem [resolvable:$true] %s1589_s4 }
 0xa75   : > { %s2596_s20 = scalar_lea.vmem %s3402_s4, 128  ;;  %s2719_s14 = smov [#allocation24]  }
 0xa76   : > { %p2597_p1 = scmp.ne.s32.totalorder %s3402_s4, %s2596_s20  ;;  %s2600_s27 = sshll.u32 %s2719_s14, 4  ;;  %s2601_s27 = int_to_ptr.vmem [resolvable:$false] %s2600_s27 }
 0xa77   : > { %s2602_s30 = scalar_lea.vmem %s2601_s27, 256  ;;  %p2603_p12 = scmp.lt.s32.totalorder %s3402_s4, %s2601_s27 }
 0xa78   : > { %p2598_p11 = pnand %p2597_p1, %p3515_p3  ;;  %p2604_p10 = scmp.lt.s32.totalorder %s2602_s30, %s2596_s20 }
 0xa79   : > { %s3400_s5 = scalar_lea.hbm %s3517_s1, %s1875_s22 }
 0xa7a   : > { %p2599_p8 = pneg %p2598_p11  ;;  %p2605_p13 = por %p2604_p10, %p2603_p12 }
 0xa7c   : > { %p2606_p7 = pnand %p2605_p13, %p2599_p8 }
 0xb36   : > { %v1561_v14 = vpop.f32.mrb[24].mxu0 }
 0xb37   : > { %v1562_v15 = vadd.f32 %v1867_v13, %v1561_v14  ;;  %v2014_v16 = vpop.f32.mrb[25].mxu0 }
 0xb38   : > { %v1564_v17 = vpop.f32.mrb[26].mxu0 }
 0xb39   : > { %v1567_v18 = vadd.f32 %v1562_v15, %v3349_v44  ;;  %v2015_v19 = vpop.f32.mrb[27].mxu0 }
 0xb3b   : > { %v1568_v20 = vsel %vm3342_vm7, %v1567_v18, 0.0 }
 0xb3c   : > { %1569 = vst.msk [vmem:[%s610_s18] sm:$0xff] %vm632_vm0, %v1568_v20 }
 0xb3d   : > { %2609 = shalt.err (!%p2606_p7)
}
 0xb3e   : > { %s2610_s19 = scalar_lea.hbm %s3400_s5, 128  ;;  %s2614_s2 = scalar_lea.hbm %s3517_s1, 256 }
 0xb3f   : > { %p2611_p2 = scmp.ne.s32.totalorder %s3400_s5, %s2610_s19  ;;  %p2615_p5 = scmp.lt.u32.totalorder %s3400_s5, %s3517_s1 }
 0xb40   : > { %p2616_p9 = scmp.lt.u32.totalorder %s2614_s2, %s2610_s19  ;;  %p2618_p1 = scmp.lt.u32.totalorder %s2610_s19, %s3400_s5 }
 0xb41   : > { %p2612_p4 = pnand %p2611_p2, %p3515_p3 }
 0xb42   : > { %p2617_p0 = por %p2616_p9, %p2615_p5 }
 0xb43   : > { %p2613_p6 = pneg %p2612_p4 }
 0xb44   : > { %p2619_p11 = por %p2618_p1, %p2617_p0 }
 0xb46   : > { %p2620_p8 = pnand %p2619_p11, %p2613_p6 }
 0xb48   : > { %2623 = shalt.err (!%p2620_p8)
}
 0xb49   : > { %2062 = dma.vmem_to_hbm [thread:$0]  (%p3515_p3), %s3402_s4, 128, %s3400_s5, %s1571_s28  }
 0xb4a PF: > { %s1617_s17 = sand.u32 1, %s2680_s23   ;;  %p3518_p12 = scmp.ne.s32.totalorder %s3493_s26, 0 }
 0xb4b   : > { %p3519_p10 = scmp.ge.s32.totalorder %s2692_s25, 2  ;;  %s1618_s20 = scalar_lea.sflag [#allocation6], %s1617_s17 }
 0xb4d   : > { %p2105_p13 = pnand %p3519_p10, %p3518_p12 }
 0xb4f   : > { %2671 = dma.done.wait (!%p2105_p13), %s1618_s20, 128  }
 0xb50   : > { %2673 = vsyncadd (!%p2105_p13), %s1618_s20, 4294967168  ;;  %s1627_s14 = scalar_lea.sflag [#allocation26], %s1617_s17 }
 0xb51   : > { %2675 = dma.done.wait (!%p2105_p13), %s1627_s14, 512  }
 0xb52   : > { %2677 = vsyncadd (!%p2105_p13), %s1627_s14, 4294966784  ;;  %p41_p3 = scmp.ge.s32.totalorder %s3087_s16, 4   ;;  %s3520_s23 = smov %s2684_s24 }
 0xb53   : > { %s3521_s24 = smov %s2688_s0  ;;  %s3522_s0 = smov %s3099_s3 }
 0xb54   : > { %s3523_s25 = smov %s3087_s16  ;;  %43 = sbr.rel (!%p41_p3) target bundleno = 27 (0x1b), region = 174 }
 0xb5b   :  { %1632 = vsyncpa [#allocation5], 1 }
 0xb5c   :  { %1634 = vsyncpa [#allocation5 + $0x1], 1 }
 0xb5d   :  { %1635 = vsyncpa [#allocation8], 1 }
 0xb5e   :  { %1636 = vsyncpa [#allocation11], 1 }
 0xb5f   :  { %1637 = vsyncpa [#allocation14], 1 }
 0xb60   :  { %1638 = vsyncpa [#allocation17], 1 }
 0xb61   :  { %1639 = vsyncpa [#allocation20], 1 }
 0xb62   :  { %1640 = vsyncpa [#allocation23], 1 }
 0xb63   :  { %1641 = vsyncpa [#allocation6], 1 }
 0xb64   :  { %1643 = vsyncpa [#allocation6 + $0x1], 1 }
 0xb65   :  { %1644 = vsyncpa [#allocation26], 1 }
 0xb66   :  { %1646 = vsyncpa [#allocation26 + $0x1], 1 }

</bundles_post_ra>
